<compile_context>
chip_gen: v6e
topology: v6e:2x2x1
jax: 0.10.0
libtpu: 0.0.40
codegen_flags: <defaults>
</compile_context>

<pallas_src>
import numpy as np

import jax
import jax.numpy as jnp
from jax.experimental import pallas as pl
from jax.experimental.pallas import tpu as pltpu


# ----------------------------------------------------------------------------
# Fused forward kernel
# ----------------------------------------------------------------------------

def _lenet6_kernel(x_ref,
                   b1e_ref, b1o_ref, c1b_ref,
                   b2e_ref, b2o_ref, c2b_ref,
                   w1_ref, f1_ref, w2_ref, f2_ref, w3_ref, f3_ref,
                   w4_ref, f4_ref,
                   o_ref,
                   xpad_ref, c1_ref, c2in_ref, c2_ref):
    """Whole LeNet6 forward for one batch block, entirely in VMEM.

    Layout: conv activations are (bn, rows, lanes) with output channels folded
    into the lane index (lane = c * W_out + ow); for every matmul the batch and
    row dims are merged into M (row counts 32 / 16 are multiples of 8 so the
    merge is a no-op reshape), so each dot is a single big 2D MXU op.
    """
    f32 = jnp.float32
    bf16 = jnp.bfloat16
    bn = x_ref.shape[0]

    # ---- input: zero only the 4 H-padding rows (W padding is in the bands) --
    xpad_ref[:, 0:2, :] = jnp.zeros((bn, 2, 28), f32)
    xpad_ref[:, 30:32, :] = jnp.zeros((bn, 2, 28), f32)
    xpad_ref[:, 2:30, :] = x_ref[...]

    # ---- conv1 (5x5, pad=2) with the width half of MaxPool folded in --------
    # b1e/b1o hold the band matrices for even/odd pooled output columns, so the
    # conv and the W-pool selection are the same matmuls.
    xf = xpad_ref[...].reshape(bn * 32, 28).astype(bf16)          # (bn*32, 28)
    se = so = None
    for kh in range(5):
        ue = jnp.dot(xf, b1e_ref[kh], preferred_element_type=f32)  # (bn*32, 84)
        uo = jnp.dot(xf, b1o_ref[kh], preferred_element_type=f32)
        ue = ue.reshape(bn, 32, 84)[:, kh:kh + 28, :]
        uo = uo.reshape(bn, 32, 84)[:, kh:kh + 28, :]
        se = ue if se is None else se + ue
        so = uo if so is None else so + uo
    c1_ref[...] = jnp.maximum(se, so)          # W-pooled conv1, pre-bias/ReLU

    # ---- height half of MaxPool + bias + ReLU -> conv2 input ----------------
    pe = c1_ref[:, pl.ds(0, 14, stride=2), :]                      # even rows
    po = c1_ref[:, pl.ds(1, 14, stride=2), :]                      # odd rows
    c2in_ref[:, 0:14, :] = jnp.maximum(jnp.maximum(pe, po) + c1b_ref[...], 0.0)
    # rows 14:16 of c2in are never read by the slices below (matmuls are
    # row-local), so they can stay uninitialized.

    # ---- conv2 (5x5, no pad) with the width half of MaxPool folded in -------
    yf = c2in_ref[...].reshape(bn * 16, 84).astype(bf16)           # (bn*16, 84)
    se2 = so2 = None
    for kh in range(5):
        ve = jnp.dot(yf, b2e_ref[kh], preferred_element_type=f32)  # (bn*16, 80)
        vo = jnp.dot(yf, b2o_ref[kh], preferred_element_type=f32)
        ve = ve.reshape(bn, 16, 80)[:, kh:kh + 10, :]
        vo = vo.reshape(bn, 16, 80)[:, kh:kh + 10, :]
        se2 = ve if se2 is None else se2 + ve
        so2 = vo if so2 is None else so2 + vo
    c2_ref[...] = jnp.maximum(se2, so2)        # (bn, 10, 80), pre-bias/ReLU

    # ---- height pool + bias + ReLU folded straight into fc1 (flatten fused) -
    h = None
    for r in range(5):
        zr = jnp.maximum(c2_ref[:, 2 * r, :], c2_ref[:, 2 * r + 1, :])
        zr = jnp.maximum(zr + c2b_ref[...], 0.0).astype(bf16)       # (bn, 80)
        hr = jnp.dot(zr, w1_ref[r], preferred_element_type=f32)     # (bn, 120)
        h = hr if h is None else h + hr
    h = jnp.maximum(h + f1_ref[...], 0.0)
    h = jnp.maximum(
        jnp.dot(h.astype(bf16), w2_ref[...], preferred_element_type=f32)
        + f2_ref[...], 0.0)
    h = jnp.maximum(
        jnp.dot(h.astype(bf16), w3_ref[...], preferred_element_type=f32)
        + f3_ref[...], 0.0)
    h = jnp.dot(h.astype(bf16), w4_ref[...], preferred_element_type=f32) \
        + f4_ref[...]
    o_ref[...] = h.astype(o_ref.dtype)


# ----------------------------------------------------------------------------
# Wrapper
# ----------------------------------------------------------------------------

def lenet6_forward(img, kp):
    """img: (N, 1, 28, 28) float32 -> logits (N, 10) float32 (one pallas_call)."""
    n = img.shape[0]
    x = img.reshape(n, 28, 28)                 # metadata-only reshape
    bn = n if n < 128 else 128                 # batch tile; grid only over batch
    grid = (pl.cdiv(n, bn),)

    weights = (kp["b1e"], kp["b1o"], kp["c1b"],
               kp["b2e"], kp["b2o"], kp["c2b"],
               kp["w1"], kp["f1"], kp["w2"], kp["f2"],
               kp["w3"], kp["f3"], kp["w4"], kp["f4"])

    def _resident(arr):
        nd = arr.ndim
        return pl.BlockSpec(arr.shape, lambda i: (0,) * nd)

    out = pl.pallas_call(
        _lenet6_kernel,
        out_shape=jax.ShapeDtypeStruct((n, 10), jnp.float32),
        grid=grid,
        in_specs=[pl.BlockSpec((bn, 28, 28), lambda i: (i, 0, 0))]
                 + [_resident(w) for w in weights],
        out_specs=pl.BlockSpec((bn, 10), lambda i: (i, 0)),
        scratch_shapes=[pltpu.VMEM((bn, 32, 28), jnp.float32),   # padded input
                        pltpu.VMEM((bn, 28, 84), jnp.float32),   # conv1 W-pooled
                        pltpu.VMEM((bn, 16, 84), jnp.float32),   # conv2 input
                        pltpu.VMEM((bn, 10, 80), jnp.float32)],  # conv2 W-pooled
        compiler_params=pltpu.CompilerParams(
            dimension_semantics=("parallel",),
            vmem_limit_bytes=48 * 1024 * 1024),
    )(x, *weights)
    return out


# ----------------------------------------------------------------------------
# Parameter preparation (canonical PyTorch layouts -> kernel-ready layouts)
# ----------------------------------------------------------------------------

def prepare_params(params):
    f32, bf16 = jnp.float32, jnp.bfloat16
    c1w = jnp.asarray(params["conv1"]["w"], f32)      # (6, 1, 5, 5)
    c1b = jnp.asarray(params["conv1"]["b"], f32)      # (6,)
    c2w = jnp.asarray(params["conv2"]["w"], f32)      # (16, 6, 5, 5)
    c2b = jnp.asarray(params["conv2"]["b"], f32)      # (16,)
    (wf1, bf1), (wf2, bf2), (wf3, bf3), (wf4, bf4) = params["fc"]

    def band(taps, in_w, out_pos, pad):
        # (in_w, len(out_pos)) with M[wi, j] = taps[wi - out_pos[j] + pad].
        wi = jnp.arange(in_w)[:, None]
        ow = jnp.asarray(out_pos, jnp.int32)[None, :]
        k = wi - ow + pad
        return jnp.where((k >= 0) & (k <= 4),
                         taps[jnp.clip(k, 0, 4)], 0.0).astype(f32)

    # conv1 band matrices for even / odd pooled output columns; lane = c*14 + j.
    ev28, od28 = list(range(0, 28, 2)), list(range(1, 28, 2))
    b1e = jnp.stack([jnp.concatenate(
        [band(c1w[co, 0, kh], 28, ev28, 2) for co in range(6)], axis=1)
        for kh in range(5)])                                        # (5, 28, 84)
    b1o = jnp.stack([jnp.concatenate(
        [band(c1w[co, 0, kh], 28, od28, 2) for co in range(6)], axis=1)
        for kh in range(5)])
    c1bias = jnp.repeat(c1b, 14).reshape(1, 84)

    # conv2: row = c_in*14 + w_in, column = c_out*5 + pooled_ow.
    ev10, od10 = list(range(0, 10, 2)), list(range(1, 10, 2))

    def conv2_band(kh, pos):
        return jnp.concatenate([
            jnp.concatenate([band(c2w[co, ci, kh], 14, pos, 0)
                             for co in range(16)], axis=1)
            for ci in range(6)], axis=0)                            # (84, 80)

    b2e = jnp.stack([conv2_band(kh, ev10) for kh in range(5)])      # (5, 84, 80)
    b2o = jnp.stack([conv2_band(kh, od10) for kh in range(5)])
    c2bias = jnp.repeat(c2b, 5).reshape(1, 80)

    # fc1: permute torch's (c, h, w) flatten order to (h, c, w) and split by h
    # so the flatten folds into per-row matmuls.
    w1 = jnp.transpose(jnp.asarray(wf1, f32).reshape(120, 16, 5, 5),
                       (2, 1, 3, 0)).reshape(5, 80, 120)            # (5, 80, 120)

    return {
        "b1e": b1e.astype(bf16), "b1o": b1o.astype(bf16), "c1b": c1bias,
        "b2e": b2e.astype(bf16), "b2o": b2o.astype(bf16), "c2b": c2bias,
        "w1": w1.astype(bf16), "f1": jnp.asarray(bf1, f32).reshape(1, 120),
        "w2": jnp.asarray(wf2, f32).T.astype(bf16),
        "f2": jnp.asarray(bf2, f32).reshape(1, 84),
        "w3": jnp.asarray(wf3, f32).T.astype(bf16),
        "f3": jnp.asarray(bf3, f32).reshape(1, 64),
        "w4": jnp.asarray(wf4, f32).T.astype(bf16),
        "f4": jnp.asarray(bf4, f32).reshape(1, 10),
    }


# ----------------------------------------------------------------------------
# Synthetic parameters (canonical PyTorch layouts) and a NumPy reference
# ----------------------------------------------------------------------------

def init_params(key):
    ks = jax.random.split(key, 12)

    def rnd(k, shape, fan_in):
        return (jax.random.normal(k, shape) / jnp.sqrt(fan_in)).astype(jnp.float32)

    return {
        "conv1": {"w": rnd(ks[0], (6, 1, 5, 5), 25.0), "b": rnd(ks[1], (6,), 25.0)},
        "conv2": {"w": rnd(ks[2], (16, 6, 5, 5), 150.0), "b": rnd(ks[3], (16,), 150.0)},
        "fc": (
            (rnd(ks[4], (120, 400), 400.0), rnd(ks[5], (120,), 400.0)),
            (rnd(ks[6], (84, 120), 120.0), rnd(ks[7], (84,), 120.0)),
            (rnd(ks[8], (64, 84), 84.0), rnd(ks[9], (64,), 84.0)),
            (rnd(ks[10], (10, 64), 64.0), rnd(ks[11], (10,), 64.0)),
        ),
    }


def lenet6_reference(img, params):
    """Plain NumPy float64 reference of the PyTorch module (logits path)."""
    def conv(x, w, b, pad):
        n, ci, h, ww = x.shape
        co, _, k, _ = w.shape
        xp = np.zeros((n, ci, h + 2 * pad, ww + 2 * pad), np.float64)
        xp[:, :, pad:pad + h, pad:pad + ww] = x
        oh, ow = xp.shape[2] - k + 1, xp.shape[3] - k + 1
        out = np.zeros((n, co, oh, ow), np.float64)
        for o in range(co):
            acc = np.zeros((n, oh, ow), np.float64)
            for i in range(ci):
                for kh in range(k):
                    for kw in range(k):
                        acc += w[o, i, kh, kw] * xp[:, i, kh:kh + oh, kw:kw + ow]
            out[:, o] = acc + b[o]
        return out

    def pool(x):
        return np.maximum(
            np.maximum(x[:, :, 0::2, 0::2], x[:, :, 0::2, 1::2]),
            np.maximum(x[:, :, 1::2, 0::2], x[:, :, 1::2, 1::2]))

    x = np.asarray(img, np.float64)
    x = pool(np.maximum(conv(x, np.asarray(params["conv1"]["w"], np.float64),
                             np.asarray(params["conv1"]["b"], np.float64), 2), 0.0))
    x = pool(np.maximum(conv(x, np.asarray(params["conv2"]["w"], np.float64),
                             np.asarray(params["conv2"]["b"], np.float64), 0), 0.0))
    x = x.reshape(x.shape[0], -1)
    for idx, (w, b) in enumerate(params["fc"]):
        x = x @ np.asarray(w, np.float64).T + np.asarray(b, np.float64)
        if idx < 3:
            x = np.maximum(x, 0.0)
    return x


# ----------------------------------------------------------------------------
# Main
# ----------------------------------------------------------------------------

if __name__ == "__main__":
    key = jax.random.PRNGKey(0)
    k_img, k_params = jax.random.split(key)

    # LeNet geometry fixes the input to (N, 1, 28, 28) (16*5*5 flatten).
    img = jax.random.normal(k_img, (2, 1, 28, 28), dtype=jnp.float32)
    params = init_params(k_params)
    kparams = prepare_params(params)           # one-time layout preparation

    fwd = jax.jit(lenet6_forward)
    logits = jax.block_until_ready(fwd(img, kparams))

    assert logits.shape == (2, 10), logits.shape
    assert logits.dtype == jnp.float32, logits.dtype
    assert bool(jnp.all(jnp.isfinite(logits)))

    ref = lenet6_reference(np.asarray(img), params)
    np.testing.assert_allclose(np.asarray(logits), ref, rtol=5e-2, atol=5e-2)

    print("KERNEL_OK")
</pallas_src>

<mosaic_0001>
module attributes {stable_mosaic.version = 11 : i64} {
  func.func @_lenet6_kernel(%arg0: i32, %arg1: memref<2x28x28xf32, #tpu.memory_space<vmem>>, %arg2: memref<5x28x84xbf16, #tpu.memory_space<vmem>>, %arg3: memref<5x28x84xbf16, #tpu.memory_space<vmem>>, %arg4: memref<1x84xf32, #tpu.memory_space<vmem>>, %arg5: memref<5x84x80xbf16, #tpu.memory_space<vmem>>, %arg6: memref<5x84x80xbf16, #tpu.memory_space<vmem>>, %arg7: memref<1x80xf32, #tpu.memory_space<vmem>>, %arg8: memref<5x80x120xbf16, #tpu.memory_space<vmem>>, %arg9: memref<1x120xf32, #tpu.memory_space<vmem>>, %arg10: memref<120x84xbf16, #tpu.memory_space<vmem>>, %arg11: memref<1x84xf32, #tpu.memory_space<vmem>>, %arg12: memref<84x64xbf16, #tpu.memory_space<vmem>>, %arg13: memref<1x64xf32, #tpu.memory_space<vmem>>, %arg14: memref<64x10xbf16, #tpu.memory_space<vmem>>, %arg15: memref<1x10xf32, #tpu.memory_space<vmem>>, %arg16: memref<2x10xf32, #tpu.memory_space<vmem>>, %arg17: memref<2x32x28xf32, #tpu.memory_space<vmem>>, %arg18: memref<2x28x84xf32, #tpu.memory_space<vmem>>, %arg19: memref<2x16x84xf32, #tpu.memory_space<vmem>>, %arg20: memref<2x10x80xf32, #tpu.memory_space<vmem>>) attributes {dimension_semantics = [#tpu.dimension_semantics<parallel>], iteration_bounds = array<i64: 1>, scalar_prefetch = 0 : i64, scratch_operands = 4 : i64, tpu.core_type = #tpu.core_type<tc>, window_params = [{transform_indices = @transform_0, window_bounds = array<i64: 2, 28, 28>}, {pipeline_mode = #tpu.pipeline_mode<synchronous>, transform_indices = @transform_1, window_bounds = array<i64: 5, 28, 84>}, {pipeline_mode = #tpu.pipeline_mode<synchronous>, transform_indices = @transform_2, window_bounds = array<i64: 5, 28, 84>}, {pipeline_mode = #tpu.pipeline_mode<synchronous>, transform_indices = @transform_3, window_bounds = array<i64: 1, 84>}, {pipeline_mode = #tpu.pipeline_mode<synchronous>, transform_indices = @transform_4, window_bounds = array<i64: 5, 84, 80>}, {pipeline_mode = #tpu.pipeline_mode<synchronous>, transform_indices = @transform_5, window_bounds = array<i64: 5, 84, 80>}, {pipeline_mode = #tpu.pipeline_mode<synchronous>, transform_indices = @transform_6, window_bounds = array<i64: 1, 80>}, {pipeline_mode = #tpu.pipeline_mode<synchronous>, transform_indices = @transform_7, window_bounds = array<i64: 5, 80, 120>}, {pipeline_mode = #tpu.pipeline_mode<synchronous>, transform_indices = @transform_8, window_bounds = array<i64: 1, 120>}, {pipeline_mode = #tpu.pipeline_mode<synchronous>, transform_indices = @transform_9, window_bounds = array<i64: 120, 84>}, {pipeline_mode = #tpu.pipeline_mode<synchronous>, transform_indices = @transform_10, window_bounds = array<i64: 1, 84>}, {pipeline_mode = #tpu.pipeline_mode<synchronous>, transform_indices = @transform_11, window_bounds = array<i64: 84, 64>}, {pipeline_mode = #tpu.pipeline_mode<synchronous>, transform_indices = @transform_12, window_bounds = array<i64: 1, 64>}, {pipeline_mode = #tpu.pipeline_mode<synchronous>, transform_indices = @transform_13, window_bounds = array<i64: 64, 10>}, {pipeline_mode = #tpu.pipeline_mode<synchronous>, transform_indices = @transform_14, window_bounds = array<i64: 1, 10>}, {transform_indices = @transform_15, window_bounds = array<i64: 2, 10>}]} {
    %cst = arith.constant 0.000000e+00 : f32
    %0 = vector.broadcast %cst : f32 to vector<2x2x28xf32>
    %c0 = arith.constant 0 : index
    %c0_0 = arith.constant 0 : index
    %c0_1 = arith.constant 0 : index
    %1 = vector.load %arg17[%c0, %c0_0, %c0_1] : memref<2x32x28xf32, #tpu.memory_space<vmem>>, vector<2x2x28xf32>
    tpu.vector_store %arg17[%c0, %c0_0, %c0_1], %0 {strides = array<i32>} : memref<2x32x28xf32, #tpu.memory_space<vmem>>, vector<2x2x28xf32>,
    %cst_2 = arith.constant 0.000000e+00 : f32
    %2 = vector.broadcast %cst_2 : f32 to vector<2x2x28xf32>
    %c0_3 = arith.constant 0 : index
    %c30 = arith.constant 30 : index
    %c0_4 = arith.constant 0 : index
    %3 = vector.load %arg17[%c0_3, %c30, %c0_4] : memref<2x32x28xf32, #tpu.memory_space<vmem>>, vector<2x2x28xf32>
    tpu.vector_store %arg17[%c0_3, %c30, %c0_4], %2 {strides = array<i32>} : memref<2x32x28xf32, #tpu.memory_space<vmem>>, vector<2x2x28xf32>,
    %c0_5 = arith.constant 0 : index
    %c0_6 = arith.constant 0 : index
    %c0_7 = arith.constant 0 : index
    %4 = vector.load %arg1[%c0_5, %c0_6, %c0_7] : memref<2x28x28xf32, #tpu.memory_space<vmem>>, vector<2x28x28xf32>
    %c0_8 = arith.constant 0 : index
    %c2 = arith.constant 2 : index
    %c0_9 = arith.constant 0 : index
    %5 = vector.load %arg17[%c0_8, %c2, %c0_9] : memref<2x32x28xf32, #tpu.memory_space<vmem>>, vector<2x28x28xf32>
    tpu.vector_store %arg17[%c0_8, %c2, %c0_9], %4 {strides = array<i32>} : memref<2x32x28xf32, #tpu.memory_space<vmem>>, vector<2x28x28xf32>,
    %c0_10 = arith.constant 0 : index
    %c0_11 = arith.constant 0 : index
    %c0_12 = arith.constant 0 : index
    %6 = vector.load %arg17[%c0_10, %c0_11, %c0_12] : memref<2x32x28xf32, #tpu.memory_space<vmem>>, vector<2x32x28xf32>
    %7 = vector.shape_cast %6 : vector<2x32x28xf32> to vector<64x28xf32>
    %8 = arith.truncf %7 : vector<64x28xf32> to vector<64x28xbf16>
    %c0_13 = arith.constant 0 : index
    %c0_14 = arith.constant 0 : index
    %c0_15 = arith.constant 0 : index
    %9 = vector.load %arg2[%c0_13, %c0_14, %c0_15] : memref<5x28x84xbf16, #tpu.memory_space<vmem>>, vector<1x28x84xbf16>
    %10 = vector.shape_cast %9 : vector<1x28x84xbf16> to vector<28x84xbf16>
    %cst_16 = arith.constant dense<0.000000e+00> : vector<64x84xf32>
    %11 = tpu.matmul %8, %10, %cst_16 {dimension_numbers = #tpu.dot_dimension_numbers<[1], [0], [0], [1], [0, 0, 1, 1], [], []>} : vector<64x28xbf16>, vector<28x84xbf16>, vector<64x84xf32> -> vector<64x84xf32>
    %c0_17 = arith.constant 0 : index
    %c0_18 = arith.constant 0 : index
    %c0_19 = arith.constant 0 : index
    %12 = vector.load %arg3[%c0_17, %c0_18, %c0_19] : memref<5x28x84xbf16, #tpu.memory_space<vmem>>, vector<1x28x84xbf16>
    %13 = vector.shape_cast %12 : vector<1x28x84xbf16> to vector<28x84xbf16>
    %cst_20 = arith.constant dense<0.000000e+00> : vector<64x84xf32>
    %14 = tpu.matmul %8, %13, %cst_20 {dimension_numbers = #tpu.dot_dimension_numbers<[1], [0], [0], [1], [0, 0, 1, 1], [], []>} : vector<64x28xbf16>, vector<28x84xbf16>, vector<64x84xf32> -> vector<64x84xf32>
    %15 = vector.shape_cast %11 : vector<64x84xf32> to vector<2x32x84xf32>
    %16 = vector.extract_strided_slice %15 {offsets = [0, 0, 0], sizes = [2, 28, 84], strides = [1, 1, 1]} : vector<2x32x84xf32> to vector<2x28x84xf32>
    %17 = vector.shape_cast %14 : vector<64x84xf32> to vector<2x32x84xf32>
    %18 = vector.extract_strided_slice %17 {offsets = [0, 0, 0], sizes = [2, 28, 84], strides = [1, 1, 1]} : vector<2x32x84xf32> to vector<2x28x84xf32>
    %c1 = arith.constant 1 : index
    %c0_21 = arith.constant 0 : index
    %c0_22 = arith.constant 0 : index
    %19 = vector.load %arg2[%c1, %c0_21, %c0_22] : memref<5x28x84xbf16, #tpu.memory_space<vmem>>, vector<1x28x84xbf16>
    %20 = vector.shape_cast %19 : vector<1x28x84xbf16> to vector<28x84xbf16>
    %cst_23 = arith.constant dense<0.000000e+00> : vector<64x84xf32>
    %21 = tpu.matmul %8, %20, %cst_23 {dimension_numbers = #tpu.dot_dimension_numbers<[1], [0], [0], [1], [0, 0, 1, 1], [], []>} : vector<64x28xbf16>, vector<28x84xbf16>, vector<64x84xf32> -> vector<64x84xf32>
    %c1_24 = arith.constant 1 : index
    %c0_25 = arith.constant 0 : index
    %c0_26 = arith.constant 0 : index
    %22 = vector.load %arg3[%c1_24, %c0_25, %c0_26] : memref<5x28x84xbf16, #tpu.memory_space<vmem>>, vector<1x28x84xbf16>
    %23 = vector.shape_cast %22 : vector<1x28x84xbf16> to vector<28x84xbf16>
    %cst_27 = arith.constant dense<0.000000e+00> : vector<64x84xf32>
    %24 = tpu.matmul %8, %23, %cst_27 {dimension_numbers = #tpu.dot_dimension_numbers<[1], [0], [0], [1], [0, 0, 1, 1], [], []>} : vector<64x28xbf16>, vector<28x84xbf16>, vector<64x84xf32> -> vector<64x84xf32>
    %25 = vector.shape_cast %21 : vector<64x84xf32> to vector<2x32x84xf32>
    %26 = vector.extract_strided_slice %25 {offsets = [0, 1, 0], sizes = [2, 28, 84], strides = [1, 1, 1]} : vector<2x32x84xf32> to vector<2x28x84xf32>
    %27 = vector.shape_cast %24 : vector<64x84xf32> to vector<2x32x84xf32>
    %28 = vector.extract_strided_slice %27 {offsets = [0, 1, 0], sizes = [2, 28, 84], strides = [1, 1, 1]} : vector<2x32x84xf32> to vector<2x28x84xf32>
    %29 = arith.addf %16, %26 : vector<2x28x84xf32>
    %30 = arith.addf %18, %28 : vector<2x28x84xf32>
    %c2_28 = arith.constant 2 : index
    %c0_29 = arith.constant 0 : index
    %c0_30 = arith.constant 0 : index
    %31 = vector.load %arg2[%c2_28, %c0_29, %c0_30] : memref<5x28x84xbf16, #tpu.memory_space<vmem>>, vector<1x28x84xbf16>
    %32 = vector.shape_cast %31 : vector<1x28x84xbf16> to vector<28x84xbf16>
    %cst_31 = arith.constant dense<0.000000e+00> : vector<64x84xf32>
    %33 = tpu.matmul %8, %32, %cst_31 {dimension_numbers = #tpu.dot_dimension_numbers<[1], [0], [0], [1], [0, 0, 1, 1], [], []>} : vector<64x28xbf16>, vector<28x84xbf16>, vector<64x84xf32> -> vector<64x84xf32>
    %c2_32 = arith.constant 2 : index
    %c0_33 = arith.constant 0 : index
    %c0_34 = arith.constant 0 : index
    %34 = vector.load %arg3[%c2_32, %c0_33, %c0_34] : memref<5x28x84xbf16, #tpu.memory_space<vmem>>, vector<1x28x84xbf16>
    %35 = vector.shape_cast %34 : vector<1x28x84xbf16> to vector<28x84xbf16>
    %cst_35 = arith.constant dense<0.000000e+00> : vector<64x84xf32>
    %36 = tpu.matmul %8, %35, %cst_35 {dimension_numbers = #tpu.dot_dimension_numbers<[1], [0], [0], [1], [0, 0, 1, 1], [], []>} : vector<64x28xbf16>, vector<28x84xbf16>, vector<64x84xf32> -> vector<64x84xf32>
    %37 = vector.shape_cast %33 : vector<64x84xf32> to vector<2x32x84xf32>
    %38 = vector.extract_strided_slice %37 {offsets = [0, 2, 0], sizes = [2, 28, 84], strides = [1, 1, 1]} : vector<2x32x84xf32> to vector<2x28x84xf32>
    %39 = vector.shape_cast %36 : vector<64x84xf32> to vector<2x32x84xf32>
    %40 = vector.extract_strided_slice %39 {offsets = [0, 2, 0], sizes = [2, 28, 84], strides = [1, 1, 1]} : vector<2x32x84xf32> to vector<2x28x84xf32>
    %41 = arith.addf %29, %38 : vector<2x28x84xf32>
    %42 = arith.addf %30, %40 : vector<2x28x84xf32>
    %c3 = arith.constant 3 : index
    %c0_36 = arith.constant 0 : index
    %c0_37 = arith.constant 0 : index
    %43 = vector.load %arg2[%c3, %c0_36, %c0_37] : memref<5x28x84xbf16, #tpu.memory_space<vmem>>, vector<1x28x84xbf16>
    %44 = vector.shape_cast %43 : vector<1x28x84xbf16> to vector<28x84xbf16>
    %cst_38 = arith.constant dense<0.000000e+00> : vector<64x84xf32>
    %45 = tpu.matmul %8, %44, %cst_38 {dimension_numbers = #tpu.dot_dimension_numbers<[1], [0], [0], [1], [0, 0, 1, 1], [], []>} : vector<64x28xbf16>, vector<28x84xbf16>, vector<64x84xf32> -> vector<64x84xf32>
    %c3_39 = arith.constant 3 : index
    %c0_40 = arith.constant 0 : index
    %c0_41 = arith.constant 0 : index
    %46 = vector.load %arg3[%c3_39, %c0_40, %c0_41] : memref<5x28x84xbf16, #tpu.memory_space<vmem>>, vector<1x28x84xbf16>
    %47 = vector.shape_cast %46 : vector<1x28x84xbf16> to vector<28x84xbf16>
    %cst_42 = arith.constant dense<0.000000e+00> : vector<64x84xf32>
    %48 = tpu.matmul %8, %47, %cst_42 {dimension_numbers = #tpu.dot_dimension_numbers<[1], [0], [0], [1], [0, 0, 1, 1], [], []>} : vector<64x28xbf16>, vector<28x84xbf16>, vector<64x84xf32> -> vector<64x84xf32>
    %49 = vector.shape_cast %45 : vector<64x84xf32> to vector<2x32x84xf32>
    %50 = vector.extract_strided_slice %49 {offsets = [0, 3, 0], sizes = [2, 28, 84], strides = [1, 1, 1]} : vector<2x32x84xf32> to vector<2x28x84xf32>
    %51 = vector.shape_cast %48 : vector<64x84xf32> to vector<2x32x84xf32>
    %52 = vector.extract_strided_slice %51 {offsets = [0, 3, 0], sizes = [2, 28, 84], strides = [1, 1, 1]} : vector<2x32x84xf32> to vector<2x28x84xf32>
    %53 = arith.addf %41, %50 : vector<2x28x84xf32>
    %54 = arith.addf %42, %52 : vector<2x28x84xf32>
    %c4 = arith.constant 4 : index
    %c0_43 = arith.constant 0 : index
    %c0_44 = arith.constant 0 : index
    %55 = vector.load %arg2[%c4, %c0_43, %c0_44] : memref<5x28x84xbf16, #tpu.memory_space<vmem>>, vector<1x28x84xbf16>
    %56 = vector.shape_cast %55 : vector<1x28x84xbf16> to vector<28x84xbf16>
    %cst_45 = arith.constant dense<0.000000e+00> : vector<64x84xf32>
    %57 = tpu.matmul %8, %56, %cst_45 {dimension_numbers = #tpu.dot_dimension_numbers<[1], [0], [0], [1], [0, 0, 1, 1], [], []>} : vector<64x28xbf16>, vector<28x84xbf16>, vector<64x84xf32> -> vector<64x84xf32>
    %c4_46 = arith.constant 4 : index
    %c0_47 = arith.constant 0 : index
    %c0_48 = arith.constant 0 : index
    %58 = vector.load %arg3[%c4_46, %c0_47, %c0_48] : memref<5x28x84xbf16, #tpu.memory_space<vmem>>, vector<1x28x84xbf16>
    %59 = vector.shape_cast %58 : vector<1x28x84xbf16> to vector<28x84xbf16>
    %cst_49 = arith.constant dense<0.000000e+00> : vector<64x84xf32>
    %60 = tpu.matmul %8, %59, %cst_49 {dimension_numbers = #tpu.dot_dimension_numbers<[1], [0], [0], [1], [0, 0, 1, 1], [], []>} : vector<64x28xbf16>, vector<28x84xbf16>, vector<64x84xf32> -> vector<64x84xf32>
    %61 = vector.shape_cast %57 : vector<64x84xf32> to vector<2x32x84xf32>
    %62 = vector.extract_strided_slice %61 {offsets = [0, 4, 0], sizes = [2, 28, 84], strides = [1, 1, 1]} : vector<2x32x84xf32> to vector<2x28x84xf32>
    %63 = vector.shape_cast %60 : vector<64x84xf32> to vector<2x32x84xf32>
    %64 = vector.extract_strided_slice %63 {offsets = [0, 4, 0], sizes = [2, 28, 84], strides = [1, 1, 1]} : vector<2x32x84xf32> to vector<2x28x84xf32>
    %65 = arith.addf %53, %62 : vector<2x28x84xf32>
    %66 = arith.addf %54, %64 : vector<2x28x84xf32>
    %67 = arith.maximumf %65, %66 : vector<2x28x84xf32>
    %c0_50 = arith.constant 0 : index
    %c0_51 = arith.constant 0 : index
    %c0_52 = arith.constant 0 : index
    %68 = vector.load %arg18[%c0_50, %c0_51, %c0_52] : memref<2x28x84xf32, #tpu.memory_space<vmem>>, vector<2x28x84xf32>
    tpu.vector_store %arg18[%c0_50, %c0_51, %c0_52], %67 {strides = array<i32>} : memref<2x28x84xf32, #tpu.memory_space<vmem>>, vector<2x28x84xf32>,
    %c0_53 = arith.constant 0 : index
    %c0_54 = arith.constant 0 : index
    %c0_55 = arith.constant 0 : index
    %69 = tpu.strided_load %arg18[%c0_53, %c0_54, %c0_55] {strides = array<i32: 1, 2, 1>} : memref<2x28x84xf32, #tpu.memory_space<vmem>>, vector<2x14x84xf32>
    %c0_56 = arith.constant 0 : index
    %c1_57 = arith.constant 1 : index
    %c0_58 = arith.constant 0 : index
    %70 = tpu.strided_load %arg18[%c0_56, %c1_57, %c0_58] {strides = array<i32: 1, 2, 1>} : memref<2x28x84xf32, #tpu.memory_space<vmem>>, vector<2x14x84xf32>
    %71 = arith.maximumf %69, %70 : vector<2x14x84xf32>
    %c0_59 = arith.constant 0 : index
    %c0_60 = arith.constant 0 : index
    %72 = vector.load %arg4[%c0_59, %c0_60] : memref<1x84xf32, #tpu.memory_space<vmem>>, vector<1x84xf32>
    %73 = vector.shape_cast %72 : vector<1x84xf32> to vector<1x1x84xf32>
    %74 = vector.broadcast %73 : vector<1x1x84xf32> to vector<2x14x84xf32>
    %75 = arith.addf %71, %74 : vector<2x14x84xf32>
    %cst_61 = arith.constant 0.000000e+00 : f32
    %76 = vector.broadcast %cst_61 : f32 to vector<2x14x84xf32>
    %77 = arith.maximumf %75, %76 : vector<2x14x84xf32>
    %c0_62 = arith.constant 0 : index
    %c0_63 = arith.constant 0 : index
    %c0_64 = arith.constant 0 : index
    %78 = vector.load %arg19[%c0_62, %c0_63, %c0_64] : memref<2x16x84xf32, #tpu.memory_space<vmem>>, vector<2x14x84xf32>
    tpu.vector_store %arg19[%c0_62, %c0_63, %c0_64], %77 {strides = array<i32>} : memref<2x16x84xf32, #tpu.memory_space<vmem>>, vector<2x14x84xf32>,
    %c0_65 = arith.constant 0 : index
    %c0_66 = arith.constant 0 : index
    %c0_67 = arith.constant 0 : index
    %79 = vector.load %arg19[%c0_65, %c0_66, %c0_67] : memref<2x16x84xf32, #tpu.memory_space<vmem>>, vector<2x16x84xf32>
    %80 = vector.shape_cast %79 : vector<2x16x84xf32> to vector<32x84xf32>
    %81 = arith.truncf %80 : vector<32x84xf32> to vector<32x84xbf16>
    %c0_68 = arith.constant 0 : index
    %c0_69 = arith.constant 0 : index
    %c0_70 = arith.constant 0 : index
    %82 = vector.load %arg5[%c0_68, %c0_69, %c0_70] : memref<5x84x80xbf16, #tpu.memory_space<vmem>>, vector<1x84x80xbf16>
    %83 = vector.shape_cast %82 : vector<1x84x80xbf16> to vector<84x80xbf16>
    %cst_71 = arith.constant dense<0.000000e+00> : vector<32x80xf32>
    %84 = tpu.matmul %81, %83, %cst_71 {dimension_numbers = #tpu.dot_dimension_numbers<[1], [0], [0], [1], [0, 0, 1, 1], [], []>} : vector<32x84xbf16>, vector<84x80xbf16>, vector<32x80xf32> -> vector<32x80xf32>
    %c0_72 = arith.constant 0 : index
    %c0_73 = arith.constant 0 : index
    %c0_74 = arith.constant 0 : index
    %85 = vector.load %arg6[%c0_72, %c0_73, %c0_74] : memref<5x84x80xbf16, #tpu.memory_space<vmem>>, vector<1x84x80xbf16>
    %86 = vector.shape_cast %85 : vector<1x84x80xbf16> to vector<84x80xbf16>
    %cst_75 = arith.constant dense<0.000000e+00> : vector<32x80xf32>
    %87 = tpu.matmul %81, %86, %cst_75 {dimension_numbers = #tpu.dot_dimension_numbers<[1], [0], [0], [1], [0, 0, 1, 1], [], []>} : vector<32x84xbf16>, vector<84x80xbf16>, vector<32x80xf32> -> vector<32x80xf32>
    %88 = vector.shape_cast %84 : vector<32x80xf32> to vector<2x16x80xf32>
    %89 = vector.extract_strided_slice %88 {offsets = [0, 0, 0], sizes = [2, 10, 80], strides = [1, 1, 1]} : vector<2x16x80xf32> to vector<2x10x80xf32>
    %90 = vector.shape_cast %87 : vector<32x80xf32> to vector<2x16x80xf32>
    %91 = vector.extract_strided_slice %90 {offsets = [0, 0, 0], sizes = [2, 10, 80], strides = [1, 1, 1]} : vector<2x16x80xf32> to vector<2x10x80xf32>
    %c1_76 = arith.constant 1 : index
    %c0_77 = arith.constant 0 : index
    %c0_78 = arith.constant 0 : index
    %92 = vector.load %arg5[%c1_76, %c0_77, %c0_78] : memref<5x84x80xbf16, #tpu.memory_space<vmem>>, vector<1x84x80xbf16>
    %93 = vector.shape_cast %92 : vector<1x84x80xbf16> to vector<84x80xbf16>
    %cst_79 = arith.constant dense<0.000000e+00> : vector<32x80xf32>
    %94 = tpu.matmul %81, %93, %cst_79 {dimension_numbers = #tpu.dot_dimension_numbers<[1], [0], [0], [1], [0, 0, 1, 1], [], []>} : vector<32x84xbf16>, vector<84x80xbf16>, vector<32x80xf32> -> vector<32x80xf32>
    %c1_80 = arith.constant 1 : index
    %c0_81 = arith.constant 0 : index
    %c0_82 = arith.constant 0 : index
    %95 = vector.load %arg6[%c1_80, %c0_81, %c0_82] : memref<5x84x80xbf16, #tpu.memory_space<vmem>>, vector<1x84x80xbf16>
    %96 = vector.shape_cast %95 : vector<1x84x80xbf16> to vector<84x80xbf16>
    %cst_83 = arith.constant dense<0.000000e+00> : vector<32x80xf32>
    %97 = tpu.matmul %81, %96, %cst_83 {dimension_numbers = #tpu.dot_dimension_numbers<[1], [0], [0], [1], [0, 0, 1, 1], [], []>} : vector<32x84xbf16>, vector<84x80xbf16>, vector<32x80xf32> -> vector<32x80xf32>
    %98 = vector.shape_cast %94 : vector<32x80xf32> to vector<2x16x80xf32>
    %99 = vector.extract_strided_slice %98 {offsets = [0, 1, 0], sizes = [2, 10, 80], strides = [1, 1, 1]} : vector<2x16x80xf32> to vector<2x10x80xf32>
    %100 = vector.shape_cast %97 : vector<32x80xf32> to vector<2x16x80xf32>
    %101 = vector.extract_strided_slice %100 {offsets = [0, 1, 0], sizes = [2, 10, 80], strides = [1, 1, 1]} : vector<2x16x80xf32> to vector<2x10x80xf32>
    %102 = arith.addf %89, %99 : vector<2x10x80xf32>
    %103 = arith.addf %91, %101 : vector<2x10x80xf32>
    %c2_84 = arith.constant 2 : index
    %c0_85 = arith.constant 0 : index
    %c0_86 = arith.constant 0 : index
    %104 = vector.load %arg5[%c2_84, %c0_85, %c0_86] : memref<5x84x80xbf16, #tpu.memory_space<vmem>>, vector<1x84x80xbf16>
    %105 = vector.shape_cast %104 : vector<1x84x80xbf16> to vector<84x80xbf16>
    %cst_87 = arith.constant dense<0.000000e+00> : vector<32x80xf32>
    %106 = tpu.matmul %81, %105, %cst_87 {dimension_numbers = #tpu.dot_dimension_numbers<[1], [0], [0], [1], [0, 0, 1, 1], [], []>} : vector<32x84xbf16>, vector<84x80xbf16>, vector<32x80xf32> -> vector<32x80xf32>
    %c2_88 = arith.constant 2 : index
    %c0_89 = arith.constant 0 : index
    %c0_90 = arith.constant 0 : index
    %107 = vector.load %arg6[%c2_88, %c0_89, %c0_90] : memref<5x84x80xbf16, #tpu.memory_space<vmem>>, vector<1x84x80xbf16>
    %108 = vector.shape_cast %107 : vector<1x84x80xbf16> to vector<84x80xbf16>
    %cst_91 = arith.constant dense<0.000000e+00> : vector<32x80xf32>
    %109 = tpu.matmul %81, %108, %cst_91 {dimension_numbers = #tpu.dot_dimension_numbers<[1], [0], [0], [1], [0, 0, 1, 1], [], []>} : vector<32x84xbf16>, vector<84x80xbf16>, vector<32x80xf32> -> vector<32x80xf32>
    %110 = vector.shape_cast %106 : vector<32x80xf32> to vector<2x16x80xf32>
    %111 = vector.extract_strided_slice %110 {offsets = [0, 2, 0], sizes = [2, 10, 80], strides = [1, 1, 1]} : vector<2x16x80xf32> to vector<2x10x80xf32>
    %112 = vector.shape_cast %109 : vector<32x80xf32> to vector<2x16x80xf32>
    %113 = vector.extract_strided_slice %112 {offsets = [0, 2, 0], sizes = [2, 10, 80], strides = [1, 1, 1]} : vector<2x16x80xf32> to vector<2x10x80xf32>
    %114 = arith.addf %102, %111 : vector<2x10x80xf32>
    %115 = arith.addf %103, %113 : vector<2x10x80xf32>
    %c3_92 = arith.constant 3 : index
    %c0_93 = arith.constant 0 : index
    %c0_94 = arith.constant 0 : index
    %116 = vector.load %arg5[%c3_92, %c0_93, %c0_94] : memref<5x84x80xbf16, #tpu.memory_space<vmem>>, vector<1x84x80xbf16>
    %117 = vector.shape_cast %116 : vector<1x84x80xbf16> to vector<84x80xbf16>
    %cst_95 = arith.constant dense<0.000000e+00> : vector<32x80xf32>
    %118 = tpu.matmul %81, %117, %cst_95 {dimension_numbers = #tpu.dot_dimension_numbers<[1], [0], [0], [1], [0, 0, 1, 1], [], []>} : vector<32x84xbf16>, vector<84x80xbf16>, vector<32x80xf32> -> vector<32x80xf32>
    %c3_96 = arith.constant 3 : index
    %c0_97 = arith.constant 0 : index
    %c0_98 = arith.constant 0 : index
    %119 = vector.load %arg6[%c3_96, %c0_97, %c0_98] : memref<5x84x80xbf16, #tpu.memory_space<vmem>>, vector<1x84x80xbf16>
    %120 = vector.shape_cast %119 : vector<1x84x80xbf16> to vector<84x80xbf16>
    %cst_99 = arith.constant dense<0.000000e+00> : vector<32x80xf32>
    %121 = tpu.matmul %81, %120, %cst_99 {dimension_numbers = #tpu.dot_dimension_numbers<[1], [0], [0], [1], [0, 0, 1, 1], [], []>} : vector<32x84xbf16>, vector<84x80xbf16>, vector<32x80xf32> -> vector<32x80xf32>
    %122 = vector.shape_cast %118 : vector<32x80xf32> to vector<2x16x80xf32>
    %123 = vector.extract_strided_slice %122 {offsets = [0, 3, 0], sizes = [2, 10, 80], strides = [1, 1, 1]} : vector<2x16x80xf32> to vector<2x10x80xf32>
    %124 = vector.shape_cast %121 : vector<32x80xf32> to vector<2x16x80xf32>
    %125 = vector.extract_strided_slice %124 {offsets = [0, 3, 0], sizes = [2, 10, 80], strides = [1, 1, 1]} : vector<2x16x80xf32> to vector<2x10x80xf32>
    %126 = arith.addf %114, %123 : vector<2x10x80xf32>
    %127 = arith.addf %115, %125 : vector<2x10x80xf32>
    %c4_100 = arith.constant 4 : index
    %c0_101 = arith.constant 0 : index
    %c0_102 = arith.constant 0 : index
    %128 = vector.load %arg5[%c4_100, %c0_101, %c0_102] : memref<5x84x80xbf16, #tpu.memory_space<vmem>>, vector<1x84x80xbf16>
    %129 = vector.shape_cast %128 : vector<1x84x80xbf16> to vector<84x80xbf16>
    %cst_103 = arith.constant dense<0.000000e+00> : vector<32x80xf32>
    %130 = tpu.matmul %81, %129, %cst_103 {dimension_numbers = #tpu.dot_dimension_numbers<[1], [0], [0], [1], [0, 0, 1, 1], [], []>} : vector<32x84xbf16>, vector<84x80xbf16>, vector<32x80xf32> -> vector<32x80xf32>
    %c4_104 = arith.constant 4 : index
    %c0_105 = arith.constant 0 : index
    %c0_106 = arith.constant 0 : index
    %131 = vector.load %arg6[%c4_104, %c0_105, %c0_106] : memref<5x84x80xbf16, #tpu.memory_space<vmem>>, vector<1x84x80xbf16>
    %132 = vector.shape_cast %131 : vector<1x84x80xbf16> to vector<84x80xbf16>
    %cst_107 = arith.constant dense<0.000000e+00> : vector<32x80xf32>
    %133 = tpu.matmul %81, %132, %cst_107 {dimension_numbers = #tpu.dot_dimension_numbers<[1], [0], [0], [1], [0, 0, 1, 1], [], []>} : vector<32x84xbf16>, vector<84x80xbf16>, vector<32x80xf32> -> vector<32x80xf32>
    %134 = vector.shape_cast %130 : vector<32x80xf32> to vector<2x16x80xf32>
    %135 = vector.extract_strided_slice %134 {offsets = [0, 4, 0], sizes = [2, 10, 80], strides = [1, 1, 1]} : vector<2x16x80xf32> to vector<2x10x80xf32>
    %136 = vector.shape_cast %133 : vector<32x80xf32> to vector<2x16x80xf32>
    %137 = vector.extract_strided_slice %136 {offsets = [0, 4, 0], sizes = [2, 10, 80], strides = [1, 1, 1]} : vector<2x16x80xf32> to vector<2x10x80xf32>
    %138 = arith.addf %126, %135 : vector<2x10x80xf32>
    %139 = arith.addf %127, %137 : vector<2x10x80xf32>
    %140 = arith.maximumf %138, %139 : vector<2x10x80xf32>
    %c0_108 = arith.constant 0 : index
    %c0_109 = arith.constant 0 : index
    %c0_110 = arith.constant 0 : index
    %141 = vector.load %arg20[%c0_108, %c0_109, %c0_110] : memref<2x10x80xf32, #tpu.memory_space<vmem>>, vector<2x10x80xf32>
    tpu.vector_store %arg20[%c0_108, %c0_109, %c0_110], %140 {strides = array<i32>} : memref<2x10x80xf32, #tpu.memory_space<vmem>>, vector<2x10x80xf32>,
    %c0_111 = arith.constant 0 : index
    %c0_112 = arith.constant 0 : index
    %c0_113 = arith.constant 0 : index
    %142 = vector.load %arg20[%c0_111, %c0_112, %c0_113] : memref<2x10x80xf32, #tpu.memory_space<vmem>>, vector<2x1x80xf32>
    %143 = vector.shape_cast %142 : vector<2x1x80xf32> to vector<2x80xf32>
    %c0_114 = arith.constant 0 : index
    %c1_115 = arith.constant 1 : index
    %c0_116 = arith.constant 0 : index
    %144 = vector.load %arg20[%c0_114, %c1_115, %c0_116] : memref<2x10x80xf32, #tpu.memory_space<vmem>>, vector<2x1x80xf32>
    %145 = vector.shape_cast %144 : vector<2x1x80xf32> to vector<2x80xf32>
    %146 = arith.maximumf %143, %145 : vector<2x80xf32>
    %c0_117 = arith.constant 0 : index
    %c0_118 = arith.constant 0 : index
    %147 = vector.load %arg7[%c0_117, %c0_118] : memref<1x80xf32, #tpu.memory_space<vmem>>, vector<1x80xf32>
    %148 = vector.broadcast %147 : vector<1x80xf32> to vector<2x80xf32>
    %149 = arith.addf %146, %148 : vector<2x80xf32>
    %cst_119 = arith.constant 0.000000e+00 : f32
    %150 = vector.broadcast %cst_119 : f32 to vector<2x80xf32>
    %151 = arith.maximumf %149, %150 : vector<2x80xf32>
    %152 = arith.truncf %151 : vector<2x80xf32> to vector<2x80xbf16>
    %c0_120 = arith.constant 0 : index
    %c0_121 = arith.constant 0 : index
    %c0_122 = arith.constant 0 : index
    %153 = vector.load %arg8[%c0_120, %c0_121, %c0_122] : memref<5x80x120xbf16, #tpu.memory_space<vmem>>, vector<1x80x120xbf16>
    %154 = vector.shape_cast %153 : vector<1x80x120xbf16> to vector<80x120xbf16>
    %cst_123 = arith.constant dense<0.000000e+00> : vector<2x120xf32>
    %155 = tpu.matmul %152, %154, %cst_123 {dimension_numbers = #tpu.dot_dimension_numbers<[1], [0], [0], [1], [0, 0, 1, 1], [], []>} : vector<2x80xbf16>, vector<80x120xbf16>, vector<2x120xf32> -> vector<2x120xf32>
    %c0_124 = arith.constant 0 : index
    %c2_125 = arith.constant 2 : index
    %c0_126 = arith.constant 0 : index
    %156 = vector.load %arg20[%c0_124, %c2_125, %c0_126] : memref<2x10x80xf32, #tpu.memory_space<vmem>>, vector<2x1x80xf32>
    %157 = vector.shape_cast %156 : vector<2x1x80xf32> to vector<2x80xf32>
    %c0_127 = arith.constant 0 : index
    %c3_128 = arith.constant 3 : index
    %c0_129 = arith.constant 0 : index
    %158 = vector.load %arg20[%c0_127, %c3_128, %c0_129] : memref<2x10x80xf32, #tpu.memory_space<vmem>>, vector<2x1x80xf32>
    %159 = vector.shape_cast %158 : vector<2x1x80xf32> to vector<2x80xf32>
    %160 = arith.maximumf %157, %159 : vector<2x80xf32>
    %c0_130 = arith.constant 0 : index
    %c0_131 = arith.constant 0 : index
    %161 = vector.load %arg7[%c0_130, %c0_131] : memref<1x80xf32, #tpu.memory_space<vmem>>, vector<1x80xf32>
    %162 = vector.broadcast %161 : vector<1x80xf32> to vector<2x80xf32>
    %163 = arith.addf %160, %162 : vector<2x80xf32>
    %cst_132 = arith.constant 0.000000e+00 : f32
    %164 = vector.broadcast %cst_132 : f32 to vector<2x80xf32>
    %165 = arith.maximumf %163, %164 : vector<2x80xf32>
    %166 = arith.truncf %165 : vector<2x80xf32> to vector<2x80xbf16>
    %c1_133 = arith.constant 1 : index
    %c0_134 = arith.constant 0 : index
    %c0_135 = arith.constant 0 : index
    %167 = vector.load %arg8[%c1_133, %c0_134, %c0_135] : memref<5x80x120xbf16, #tpu.memory_space<vmem>>, vector<1x80x120xbf16>
    %168 = vector.shape_cast %167 : vector<1x80x120xbf16> to vector<80x120xbf16>
    %cst_136 = arith.constant dense<0.000000e+00> : vector<2x120xf32>
    %169 = tpu.matmul %166, %168, %cst_136 {dimension_numbers = #tpu.dot_dimension_numbers<[1], [0], [0], [1], [0, 0, 1, 1], [], []>} : vector<2x80xbf16>, vector<80x120xbf16>, vector<2x120xf32> -> vector<2x120xf32>
    %170 = arith.addf %155, %169 : vector<2x120xf32>
    %c0_137 = arith.constant 0 : index
    %c4_138 = arith.constant 4 : index
    %c0_139 = arith.constant 0 : index
    %171 = vector.load %arg20[%c0_137, %c4_138, %c0_139] : memref<2x10x80xf32, #tpu.memory_space<vmem>>, vector<2x1x80xf32>
    %172 = vector.shape_cast %171 : vector<2x1x80xf32> to vector<2x80xf32>
    %c0_140 = arith.constant 0 : index
    %c5 = arith.constant 5 : index
    %c0_141 = arith.constant 0 : index
    %173 = vector.load %arg20[%c0_140, %c5, %c0_141] : memref<2x10x80xf32, #tpu.memory_space<vmem>>, vector<2x1x80xf32>
    %174 = vector.shape_cast %173 : vector<2x1x80xf32> to vector<2x80xf32>
    %175 = arith.maximumf %172, %174 : vector<2x80xf32>
    %c0_142 = arith.constant 0 : index
    %c0_143 = arith.constant 0 : index
    %176 = vector.load %arg7[%c0_142, %c0_143] : memref<1x80xf32, #tpu.memory_space<vmem>>, vector<1x80xf32>
    %177 = vector.broadcast %176 : vector<1x80xf32> to vector<2x80xf32>
    %178 = arith.addf %175, %177 : vector<2x80xf32>
    %cst_144 = arith.constant 0.000000e+00 : f32
    %179 = vector.broadcast %cst_144 : f32 to vector<2x80xf32>
    %180 = arith.maximumf %178, %179 : vector<2x80xf32>
    %181 = arith.truncf %180 : vector<2x80xf32> to vector<2x80xbf16>
    %c2_145 = arith.constant 2 : index
    %c0_146 = arith.constant 0 : index
    %c0_147 = arith.constant 0 : index
    %182 = vector.load %arg8[%c2_145, %c0_146, %c0_147] : memref<5x80x120xbf16, #tpu.memory_space<vmem>>, vector<1x80x120xbf16>
    %183 = vector.shape_cast %182 : vector<1x80x120xbf16> to vector<80x120xbf16>
    %cst_148 = arith.constant dense<0.000000e+00> : vector<2x120xf32>
    %184 = tpu.matmul %181, %183, %cst_148 {dimension_numbers = #tpu.dot_dimension_numbers<[1], [0], [0], [1], [0, 0, 1, 1], [], []>} : vector<2x80xbf16>, vector<80x120xbf16>, vector<2x120xf32> -> vector<2x120xf32>
    %185 = arith.addf %170, %184 : vector<2x120xf32>
    %c0_149 = arith.constant 0 : index
    %c6 = arith.constant 6 : index
    %c0_150 = arith.constant 0 : index
    %186 = vector.load %arg20[%c0_149, %c6, %c0_150] : memref<2x10x80xf32, #tpu.memory_space<vmem>>, vector<2x1x80xf32>
    %187 = vector.shape_cast %186 : vector<2x1x80xf32> to vector<2x80xf32>
    %c0_151 = arith.constant 0 : index
    %c7 = arith.constant 7 : index
    %c0_152 = arith.constant 0 : index
    %188 = vector.load %arg20[%c0_151, %c7, %c0_152] : memref<2x10x80xf32, #tpu.memory_space<vmem>>, vector<2x1x80xf32>
    %189 = vector.shape_cast %188 : vector<2x1x80xf32> to vector<2x80xf32>
    %190 = arith.maximumf %187, %189 : vector<2x80xf32>
    %c0_153 = arith.constant 0 : index
    %c0_154 = arith.constant 0 : index
    %191 = vector.load %arg7[%c0_153, %c0_154] : memref<1x80xf32, #tpu.memory_space<vmem>>, vector<1x80xf32>
    %192 = vector.broadcast %191 : vector<1x80xf32> to vector<2x80xf32>
    %193 = arith.addf %190, %192 : vector<2x80xf32>
    %cst_155 = arith.constant 0.000000e+00 : f32
    %194 = vector.broadcast %cst_155 : f32 to vector<2x80xf32>
    %195 = arith.maximumf %193, %194 : vector<2x80xf32>
    %196 = arith.truncf %195 : vector<2x80xf32> to vector<2x80xbf16>
    %c3_156 = arith.constant 3 : index
    %c0_157 = arith.constant 0 : index
    %c0_158 = arith.constant 0 : index
    %197 = vector.load %arg8[%c3_156, %c0_157, %c0_158] : memref<5x80x120xbf16, #tpu.memory_space<vmem>>, vector<1x80x120xbf16>
    %198 = vector.shape_cast %197 : vector<1x80x120xbf16> to vector<80x120xbf16>
    %cst_159 = arith.constant dense<0.000000e+00> : vector<2x120xf32>
    %199 = tpu.matmul %196, %198, %cst_159 {dimension_numbers = #tpu.dot_dimension_numbers<[1], [0], [0], [1], [0, 0, 1, 1], [], []>} : vector<2x80xbf16>, vector<80x120xbf16>, vector<2x120xf32> -> vector<2x120xf32>
    %200 = arith.addf %185, %199 : vector<2x120xf32>
    %c0_160 = arith.constant 0 : index
    %c8 = arith.constant 8 : index
    %c0_161 = arith.constant 0 : index
    %201 = vector.load %arg20[%c0_160, %c8, %c0_161] : memref<2x10x80xf32, #tpu.memory_space<vmem>>, vector<2x1x80xf32>
    %202 = vector.shape_cast %201 : vector<2x1x80xf32> to vector<2x80xf32>
    %c0_162 = arith.constant 0 : index
    %c9 = arith.constant 9 : index
    %c0_163 = arith.constant 0 : index
    %203 = vector.load %arg20[%c0_162, %c9, %c0_163] : memref<2x10x80xf32, #tpu.memory_space<vmem>>, vector<2x1x80xf32>
    %204 = vector.shape_cast %203 : vector<2x1x80xf32> to vector<2x80xf32>
    %205 = arith.maximumf %202, %204 : vector<2x80xf32>
    %c0_164 = arith.constant 0 : index
    %c0_165 = arith.constant 0 : index
    %206 = vector.load %arg7[%c0_164, %c0_165] : memref<1x80xf32, #tpu.memory_space<vmem>>, vector<1x80xf32>
    %207 = vector.broadcast %206 : vector<1x80xf32> to vector<2x80xf32>
    %208 = arith.addf %205, %207 : vector<2x80xf32>
    %cst_166 = arith.constant 0.000000e+00 : f32
    %209 = vector.broadcast %cst_166 : f32 to vector<2x80xf32>
    %210 = arith.maximumf %208, %209 : vector<2x80xf32>
    %211 = arith.truncf %210 : vector<2x80xf32> to vector<2x80xbf16>
    %c4_167 = arith.constant 4 : index
    %c0_168 = arith.constant 0 : index
    %c0_169 = arith.constant 0 : index
    %212 = vector.load %arg8[%c4_167, %c0_168, %c0_169] : memref<5x80x120xbf16, #tpu.memory_space<vmem>>, vector<1x80x120xbf16>
    %213 = vector.shape_cast %212 : vector<1x80x120xbf16> to vector<80x120xbf16>
    %cst_170 = arith.constant dense<0.000000e+00> : vector<2x120xf32>
    %214 = tpu.matmul %211, %213, %cst_170 {dimension_numbers = #tpu.dot_dimension_numbers<[1], [0], [0], [1], [0, 0, 1, 1], [], []>} : vector<2x80xbf16>, vector<80x120xbf16>, vector<2x120xf32> -> vector<2x120xf32>
    %215 = arith.addf %200, %214 : vector<2x120xf32>
    %c0_171 = arith.constant 0 : index
    %c0_172 = arith.constant 0 : index
    %216 = vector.load %arg9[%c0_171, %c0_172] : memref<1x120xf32, #tpu.memory_space<vmem>>, vector<1x120xf32>
    %217 = vector.broadcast %216 : vector<1x120xf32> to vector<2x120xf32>
    %218 = arith.addf %215, %217 : vector<2x120xf32>
    %cst_173 = arith.constant 0.000000e+00 : f32
    %219 = vector.broadcast %cst_173 : f32 to vector<2x120xf32>
    %220 = arith.maximumf %218, %219 : vector<2x120xf32>
    %221 = arith.truncf %220 : vector<2x120xf32> to vector<2x120xbf16>
    %c0_174 = arith.constant 0 : index
    %c0_175 = arith.constant 0 : index
    %222 = vector.load %arg10[%c0_174, %c0_175] : memref<120x84xbf16, #tpu.memory_space<vmem>>, vector<120x84xbf16>
    %cst_176 = arith.constant dense<0.000000e+00> : vector<2x84xf32>
    %223 = tpu.matmul %221, %222, %cst_176 {dimension_numbers = #tpu.dot_dimension_numbers<[1], [0], [0], [1], [0, 0, 1, 1], [], []>} : vector<2x120xbf16>, vector<120x84xbf16>, vector<2x84xf32> -> vector<2x84xf32>
    %c0_177 = arith.constant 0 : index
    %c0_178 = arith.constant 0 : index
    %224 = vector.load %arg11[%c0_177, %c0_178] : memref<1x84xf32, #tpu.memory_space<vmem>>, vector<1x84xf32>
    %225 = vector.broadcast %224 : vector<1x84xf32> to vector<2x84xf32>
    %226 = arith.addf %223, %225 : vector<2x84xf32>
    %cst_179 = arith.constant 0.000000e+00 : f32
    %227 = vector.broadcast %cst_179 : f32 to vector<2x84xf32>
    %228 = arith.maximumf %226, %227 : vector<2x84xf32>
    %229 = arith.truncf %228 : vector<2x84xf32> to vector<2x84xbf16>
    %c0_180 = arith.constant 0 : index
    %c0_181 = arith.constant 0 : index
    %230 = vector.load %arg12[%c0_180, %c0_181] : memref<84x64xbf16, #tpu.memory_space<vmem>>, vector<84x64xbf16>
    %cst_182 = arith.constant dense<0.000000e+00> : vector<2x64xf32>
    %231 = tpu.matmul %229, %230, %cst_182 {dimension_numbers = #tpu.dot_dimension_numbers<[1], [0], [0], [1], [0, 0, 1, 1], [], []>} : vector<2x84xbf16>, vector<84x64xbf16>, vector<2x64xf32> -> vector<2x64xf32>
    %c0_183 = arith.constant 0 : index
    %c0_184 = arith.constant 0 : index
    %232 = vector.load %arg13[%c0_183, %c0_184] : memref<1x64xf32, #tpu.memory_space<vmem>>, vector<1x64xf32>
    %233 = vector.broadcast %232 : vector<1x64xf32> to vector<2x64xf32>
    %234 = arith.addf %231, %233 : vector<2x64xf32>
    %cst_185 = arith.constant 0.000000e+00 : f32
    %235 = vector.broadcast %cst_185 : f32 to vector<2x64xf32>
    %236 = arith.maximumf %234, %235 : vector<2x64xf32>
    %237 = arith.truncf %236 : vector<2x64xf32> to vector<2x64xbf16>
    %c0_186 = arith.constant 0 : index
    %c0_187 = arith.constant 0 : index
    %238 = vector.load %arg14[%c0_186, %c0_187] : memref<64x10xbf16, #tpu.memory_space<vmem>>, vector<64x10xbf16>
    %cst_188 = arith.constant dense<0.000000e+00> : vector<2x10xf32>
    %239 = tpu.matmul %237, %238, %cst_188 {dimension_numbers = #tpu.dot_dimension_numbers<[1], [0], [0], [1], [0, 0, 1, 1], [], []>} : vector<2x64xbf16>, vector<64x10xbf16>, vector<2x10xf32> -> vector<2x10xf32>
    %c0_189 = arith.constant 0 : index
    %c0_190 = arith.constant 0 : index
    %240 = vector.load %arg15[%c0_189, %c0_190] : memref<1x10xf32, #tpu.memory_space<vmem>>, vector<1x10xf32>
    %241 = vector.broadcast %240 : vector<1x10xf32> to vector<2x10xf32>
    %242 = arith.addf %239, %241 : vector<2x10xf32>
    %c0_191 = arith.constant 0 : index
    %c0_192 = arith.constant 0 : index
    %243 = vector.load %arg16[%c0_191, %c0_192] : memref<2x10xf32, #tpu.memory_space<vmem>>, vector<2x10xf32>
    tpu.vector_store %arg16[%c0_191, %c0_192], %242 {strides = array<i32>} : memref<2x10xf32, #tpu.memory_space<vmem>>, vector<2x10xf32>,
    return
  }
  func.func @transform_0(%arg0: i32) -> (i32, i32, i32) {
    %c0_i32 = arith.constant 0 : i32
    %c0_i32_0 = arith.constant 0 : i32
    %c0_i32_1 = arith.constant 0 : i32
    return %arg0, %c0_i32, %c0_i32_0 : i32, i32, i32
  }
  func.func @transform_1(%arg0: i32) -> (i32, i32, i32) {
    %c0_i32 = arith.constant 0 : i32
    %c0_i32_0 = arith.constant 0 : i32
    %c0_i32_1 = arith.constant 0 : i32
    %c0_i32_2 = arith.constant 0 : i32
    return %c0_i32, %c0_i32_0, %c0_i32_1 : i32, i32, i32
  }
  func.func @transform_2(%arg0: i32) -> (i32, i32, i32) {
    %c0_i32 = arith.constant 0 : i32
    %c0_i32_0 = arith.constant 0 : i32
    %c0_i32_1 = arith.constant 0 : i32
    %c0_i32_2 = arith.constant 0 : i32
    return %c0_i32, %c0_i32_0, %c0_i32_1 : i32, i32, i32
  }
  func.func @transform_3(%arg0: i32) -> (i32, i32) {
    %c0_i32 = arith.constant 0 : i32
    %c0_i32_0 = arith.constant 0 : i32
    %c0_i32_1 = arith.constant 0 : i32
    return %c0_i32, %c0_i32_0 : i32, i32
  }
  func.func @transform_4(%arg0: i32) -> (i32, i32, i32) {
    %c0_i32 = arith.constant 0 : i32
    %c0_i32_0 = arith.constant 0 : i32
    %c0_i32_1 = arith.constant 0 : i32
    %c0_i32_2 = arith.constant 0 : i32
    return %c0_i32, %c0_i32_0, %c0_i32_1 : i32, i32, i32
  }
  func.func @transform_5(%arg0: i32) -> (i32, i32, i32) {
    %c0_i32 = arith.constant 0 : i32
    %c0_i32_0 = arith.constant 0 : i32
    %c0_i32_1 = arith.constant 0 : i32
    %c0_i32_2 = arith.constant 0 : i32
    return %c0_i32, %c0_i32_0, %c0_i32_1 : i32, i32, i32
  }
  func.func @transform_6(%arg0: i32) -> (i32, i32) {
    %c0_i32 = arith.constant 0 : i32
    %c0_i32_0 = arith.constant 0 : i32
    %c0_i32_1 = arith.constant 0 : i32
    return %c0_i32, %c0_i32_0 : i32, i32
  }
  func.func @transform_7(%arg0: i32) -> (i32, i32, i32) {
    %c0_i32 = arith.constant 0 : i32
    %c0_i32_0 = arith.constant 0 : i32
    %c0_i32_1 = arith.constant 0 : i32
    %c0_i32_2 = arith.constant 0 : i32
    return %c0_i32, %c0_i32_0, %c0_i32_1 : i32, i32, i32
  }
  func.func @transform_8(%arg0: i32) -> (i32, i32) {
    %c0_i32 = arith.constant 0 : i32
    %c0_i32_0 = arith.constant 0 : i32
    %c0_i32_1 = arith.constant 0 : i32
    return %c0_i32, %c0_i32_0 : i32, i32
  }
  func.func @transform_9(%arg0: i32) -> (i32, i32) {
    %c0_i32 = arith.constant 0 : i32
    %c0_i32_0 = arith.constant 0 : i32
    %c0_i32_1 = arith.constant 0 : i32
    return %c0_i32, %c0_i32_0 : i32, i32
  }
  func.func @transform_10(%arg0: i32) -> (i32, i32) {
    %c0_i32 = arith.constant 0 : i32
    %c0_i32_0 = arith.constant 0 : i32
    %c0_i32_1 = arith.constant 0 : i32
    return %c0_i32, %c0_i32_0 : i32, i32
  }
  func.func @transform_11(%arg0: i32) -> (i32, i32) {
    %c0_i32 = arith.constant 0 : i32
    %c0_i32_0 = arith.constant 0 : i32
    %c0_i32_1 = arith.constant 0 : i32
    return %c0_i32, %c0_i32_0 : i32, i32
  }
  func.func @transform_12(%arg0: i32) -> (i32, i32) {
    %c0_i32 = arith.constant 0 : i32
    %c0_i32_0 = arith.constant 0 : i32
    %c0_i32_1 = arith.constant 0 : i32
    return %c0_i32, %c0_i32_0 : i32, i32
  }
  func.func @transform_13(%arg0: i32) -> (i32, i32) {
    %c0_i32 = arith.constant 0 : i32
    %c0_i32_0 = arith.constant 0 : i32
    %c0_i32_1 = arith.constant 0 : i32
    return %c0_i32, %c0_i32_0 : i32, i32
  }
  func.func @transform_14(%arg0: i32) -> (i32, i32) {
    %c0_i32 = arith.constant 0 : i32
    %c0_i32_0 = arith.constant 0 : i32
    %c0_i32_1 = arith.constant 0 : i32
    return %c0_i32, %c0_i32_0 : i32, i32
  }
  func.func @transform_15(%arg0: i32) -> (i32, i32) {
    %c0_i32 = arith.constant 0 : i32
    %c0_i32_0 = arith.constant 0 : i32
    return %arg0, %c0_i32 : i32, i32
  }
}

</mosaic_0001>

<bundles_post_ra>
// kernel: lenet6_forward.1
= control target key start
LH: loop header
LB: loop body
LE: loop exit
PB: predicated region body
PF: predicated region fallthrough
CT: control target
= control target key end

     0   :  { %vm114_vm0 = vcmask 1045504   ;;  %vm52_vm1 = vcmask 222208   ;;  %vm65_vm2 = vcmask 228352   ;;  %v4400_v8 = vmov 0.0   ;;  %s5401_s0 = inlined_call_operand.vmem [shape: f32[2,28,28], index: 0, kind: input, shape index: {}]   ;;  %s5402_s1 = inlined_call_operand.vmem [shape: bf16[5,28,84], index: 1, kind: input, shape index: {}]   ;;  %s5403_s2 = inlined_call_operand.vmem [shape: bf16[5,28,84], index: 2, kind: input, shape index: {}]   ;;  %s5404_s3 = inlined_call_operand.vmem [shape: f32[1,84], index: 3, kind: input, shape index: {}]   ;;  %s5405_s4 = inlined_call_operand.vmem [shape: bf16[5,84,80], index: 4, kind: input, shape index: {}]   ;;  %s5406_s5 = inlined_call_operand.vmem [shape: bf16[5,84,80], index: 5, kind: input, shape index: {}]   ;;  %s5407_s6 = inlined_call_operand.vmem [shape: f32[1,80], index: 6, kind: input, shape index: {}]   ;;  %s5408_s7 = inlined_call_operand.vmem [shape: bf16[5,80,120], index: 7, kind: input, shape index: {}]   ;;  %s5409_s8 = inlined_call_operand.vmem [shape: f32[1,120], index: 8, kind: input, shape index: {}]   ;;  %s5410_s9 = inlined_call_operand.vmem [shape: bf16[120,84], index: 9, kind: input, shape index: {}]   ;;  %s5411_s10 = inlined_call_operand.vmem [shape: f32[1,84], index: 10, kind: input, shape index: {}]   ;;  %s5412_s11 = inlined_call_operand.vmem [shape: bf16[84,64], index: 11, kind: input, shape index: {}]   ;;  %s5413_s12 = inlined_call_operand.vmem [shape: f32[1,64], index: 12, kind: input, shape index: {}]   ;;  %s5414_s13 = inlined_call_operand.vmem [shape: bf16[64,10], index: 13, kind: input, shape index: {}]   ;;  %s5415_s14 = inlined_call_operand.vmem [shape: f32[1,10], index: 14, kind: input, shape index: {}]   ;;  %s5416_s15 = inlined_call_operand.hbm [shape: f32[2,10], index: 15, kind: output, shape index: {}]  }
   0x1   :  { %v4255_v0 = vld [vmem:[%s5402_s1 + $0x8] sm:$0x3f]   ;;  %v4257_v1 = vld [vmem:[%s5402_s1] sm:$0xff]   ;;  %53 = vst.msk [vmem:[#allocation2] sm:$0x3] %vm52_vm1, %v4400_v8  ;;  %v59_v11 = vld [vmem:[%s5401_s0 + $0x10] sm:$0xff] }
   0x2   :  { %4232 = vmatprep.subr.msk.bf16.mxu0 %vm114_vm0, %v4255_v0  ;;  %v4256_v2 = vld [vmem:[%s5403_s2 + $0x8] sm:$0x3f]   ;;  %v116_v3 = vsel %vm114_vm0, %v4255_v0, 0  ;;  %v4258_v4 = vld [vmem:[%s5403_s2] sm:$0xff]   ;;  %54 = vst.msk [vmem:[#allocation2 + $0x20] sm:$0x3] %vm52_vm1, %v4400_v8 }
   0x3   :  { %3835 = vmatpush3.bf16.msra.mxu0 %v116_v3  ;;  %4233 = vmatprep.subr.msk.bf16.mxu1 %vm114_vm0, %v4256_v2  ;;  %v199_v5 = vsel %vm114_vm0, %v4256_v2, 0  ;;  %v57_v6 = vld [vmem:[%s5401_s0] sm:$0xff]  ;;  %v58_v7 = vld [vmem:[%s5401_s0 + $0x8] sm:$0xff]  ;;  %55 = vst.msk [vmem:[#allocation2 + $0x1e] sm:$0x3] %vm52_vm1, %v4400_v8  ;;  %vm69_vm3 = vcmask 224256  }
   0x4   :  { %3836 = vmatprep.subr.bf16.mxu0 %v4257_v1  ;;  %3847 = vmatpush3.bf16.msra.mxu1 %v199_v5  ;;  %66 = vst.msk [vmem:[#allocation2 + $0x2] sm:$0xff] %vm65_vm2, %v57_v6  ;;  %67 = vst.msk [vmem:[#allocation2 + $0xa] sm:$0xff] %vm65_vm2, %v58_v7  ;;  %v4259_v9 = vld [vmem:[%s5402_s1 + $0x18] sm:$0x3f]   ;;  %v61_v13 = vld [vmem:[%s5401_s0 + $0x20] sm:$0xff] }
   0x5   :  { %56 = vst.msk [vmem:[#allocation2 + $0x3e] sm:$0x3] %vm52_vm1, %v4400_v8  ;;  %3848 = vmatprep.subr.bf16.mxu1 %v4258_v4  ;;  %v4260_v10 = vld [vmem:[%s5403_s2 + $0x18] sm:$0x3f]   ;;  %v62_v14 = vld [vmem:[%s5401_s0 + $0x28] sm:$0xff]  ;;  %v63_v15 = vld [vmem:[%s5401_s0 + $0x30] sm:$0xff] }
   0x6   :  { %v60_v12 = vld [vmem:[%s5401_s0 + $0x18] sm:$0xf]  ;;  %68 = vst.msk [vmem:[#allocation2 + $0x12] sm:$0xff] %vm65_vm2, %v59_v11  ;;  %71 = vst.msk [vmem:[#allocation2 + $0x22] sm:$0xff] %vm65_vm2, %v61_v13  ;;  %v283_v22 = vsel %vm114_vm0, %v4259_v9, 0  ;;  %v4261_v24 = vld [vmem:[%s5402_s1 + $0x10] sm:$0xff]  }
   0x7   :  { %3837 = vmatpush3.bf16.msra.mxu0 %v4257_v1  ;;  %70 = vst.msk [vmem:[#allocation2 + $0x1a] sm:$0xf] %vm69_vm3, %v60_v12  ;;  %v64_v16 = vld [vmem:[%s5401_s0 + $0x38] sm:$0xf]  ;;  %v4262_v25 = vld [vmem:[%s5403_s2 + $0x10] sm:$0xff]   ;;  %v367_v27 = vsel %vm114_vm0, %v4260_v10, 0 }
   0x8   :  { %4234 = vmatprep.subr.msk.bf16.mxu0 %vm114_vm0, %v4259_v9  ;;  %3849 = vmatpush3.bf16.msra.mxu1 %v4258_v4  ;;  %72 = vst.msk [vmem:[#allocation2 + $0x2a] sm:$0xff] %vm65_vm2, %v62_v14  ;;  %73 = vst.msk [vmem:[#allocation2 + $0x32] sm:$0xff] %vm65_vm2, %v63_v15  ;;  %v4263_v29 = vld [vmem:[%s5402_s1 + $0x28] sm:$0x3f]   ;;  %v4267_v33 = vld [vmem:[%s5402_s1 + $0x38] sm:$0x3f]  }
   0x9   :  { %4235 = vmatprep.subr.msk.bf16.mxu1 %vm114_vm0, %v4260_v10  ;;  %74 = vst.msk [vmem:[#allocation2 + $0x3a] sm:$0xf] %vm69_vm3, %v64_v16  ;;  %v4264_v31 = vld [vmem:[%s5403_s2 + $0x28] sm:$0x3f]   ;;  %v4268_v35 = vld [vmem:[%s5403_s2 + $0x38] sm:$0x3f]  }
   0xa   :  { %v528_v36 = vsel %vm114_vm0, %v4263_v29, 0  ;;  %v612_v37 = vsel %vm114_vm0, %v4264_v31, 0  ;;  %v4271_v39 = vld [vmem:[%s5402_s1 + $0x48] sm:$0x3f]   ;;  %v772_v41 = vsel %vm114_vm0, %v4267_v33, 0  ;;  %v856_v42 = vsel %vm114_vm0, %v4268_v35, 0 }
   0xb   :  { %v75_v17 = vld [vmem:[#allocation2] sm:$0xff]  ;;  %v76_v18 = vld [vmem:[#allocation2 + $0x8] sm:$0xff]  ;;  %v1017_v43 = vsel %vm114_vm0, %v4271_v39, 0  ;;  %v4269_v47 = vld [vmem:[%s5402_s1 + $0x30] sm:$0xff]  }
   0xc   :  { %v4541_v19 = vpack.c.bf16 %v76_v18, %v75_v17  ;;  %v4272_v40 = vld [vmem:[%s5403_s2 + $0x48] sm:$0x3f]   ;;  %v4265_v45 = vld [vmem:[%s5402_s1 + $0x20] sm:$0xff]   ;;  %v4270_v48 = vld [vmem:[%s5403_s2 + $0x30] sm:$0xff]  }
   0xd   :  { %v77_v20 = vld [vmem:[#allocation2 + $0x10] sm:$0xff]  ;;  %v79_v23 = vld [vmem:[#allocation2 + $0x20] sm:$0xff]  ;;  %v1101_v44 = vsel %vm114_vm0, %v4272_v40, 0 }
   0xe   :  { %3838 = vmatprep.mubr.msk.bf16.mxu0 %vm65_vm2, %v4541_v19  ;;  %3850 = vmatprep.mubr.msk.bf16.mxu1 %vm65_vm2, %v4541_v19  ;;  %v78_v21 = vld [vmem:[#allocation2 + $0x18] sm:$0xff]  ;;  %v4266_v46 = vld [vmem:[%s5403_s2 + $0x20] sm:$0xff]  }
   0xf   :  { %v4554_v26 = vpack.c.bf16 %v78_v21, %v77_v20  ;;  %v80_v28 = vld [vmem:[#allocation2 + $0x28] sm:$0xff]  ;;  %v81_v32 = vld [vmem:[#allocation2 + $0x30] sm:$0xff]  ;;  %v4273_v49 = vld [vmem:[%s5402_s1 + $0x40] sm:$0xff]  }
  0x10   :  { %v4560_v30 = vpack.c.bf16 %v80_v28, %v79_v23  ;;  %v82_v34 = vld [vmem:[#allocation2 + $0x38] sm:$0xff]  ;;  %v4274_v50 = vld [vmem:[%s5403_s2 + $0x40] sm:$0xff]  }
  0x11   :  { %3839 = vmatmul.mubr.msk.bf16.vlgmr.msra.gmra.mxu0 %vm65_vm2, %v4554_v26  ;;  %3851 = vmatmul.mubr.msk.bf16.vlgmr.msra.gmra.mxu1 %vm65_vm2, %v4554_v26  ;;  %v4581_v38 = vpack.c.bf16 %v82_v34, %v81_v32 }
  0x12   :  { %3859 = vmatpush3.bf16.msra.mxu0 %v283_v22  ;;  %3871 = vmatpush3.bf16.msra.mxu1 %v367_v27 }
  0x13   :  { %3842 = vmatprep.mubr.msk.bf16.mxu0 %vm65_vm2, %v4560_v30  ;;  %3854 = vmatprep.mubr.msk.bf16.mxu1 %vm65_vm2, %v4560_v30 }
  0x14   :  { %3860 = vmatprep.subr.bf16.mxu0 %v4261_v24  ;;  %3872 = vmatprep.subr.bf16.mxu1 %v4262_v25 }
  0x16   :  { %3861 = vmatpush3.bf16.msra.mxu0 %v4261_v24  ;;  %3873 = vmatpush3.bf16.msra.mxu1 %v4262_v25 }
  0x17   :  { %4236 = vmatprep.subr.msk.bf16.mxu0 %vm114_vm0, %v4263_v29  ;;  %4237 = vmatprep.subr.msk.bf16.mxu1 %vm114_vm0, %v4264_v31 }
  0x19   :  { %3843 = vmatmul.mubr.msk.bf16.gmra.mxu0 %vm65_vm2, %v4581_v38  ;;  %3855 = vmatmul.mubr.msk.bf16.gmra.mxu1 %vm65_vm2, %v4581_v38 }
  0x1a   :  { %3862 = vmatprep.mubr.msk.bf16.mxu0 %vm65_vm2, %v4541_v19  ;;  %3874 = vmatprep.mubr.msk.bf16.mxu1 %vm65_vm2, %v4541_v19 }
  0x21   :  { %3863 = vmatmul.mubr.msk.bf16.vlgmr.msra.gmra.mxu0 %vm65_vm2, %v4554_v26  ;;  %3875 = vmatmul.mubr.msk.bf16.vlgmr.msra.gmra.mxu1 %vm65_vm2, %v4554_v26 }
  0x22   :  { %3883 = vmatpush3.bf16.msra.mxu0 %v528_v36  ;;  %3895 = vmatpush3.bf16.msra.mxu1 %v612_v37 }
  0x23   :  { %3866 = vmatprep.mubr.msk.bf16.mxu0 %vm65_vm2, %v4560_v30  ;;  %3878 = vmatprep.mubr.msk.bf16.mxu1 %vm65_vm2, %v4560_v30 }
  0x24   :  { %3884 = vmatprep.subr.bf16.mxu0 %v4265_v45  ;;  %3896 = vmatprep.subr.bf16.mxu1 %v4266_v46 }
  0x26   :  { %3885 = vmatpush3.bf16.msra.mxu0 %v4265_v45  ;;  %3897 = vmatpush3.bf16.msra.mxu1 %v4266_v46 }
  0x27   :  { %4238 = vmatprep.subr.msk.bf16.mxu0 %vm114_vm0, %v4267_v33  ;;  %4239 = vmatprep.subr.msk.bf16.mxu1 %vm114_vm0, %v4268_v35 }
  0x29   :  { %3867 = vmatmul.mubr.msk.bf16.gmra.mxu0 %vm65_vm2, %v4581_v38  ;;  %3879 = vmatmul.mubr.msk.bf16.gmra.mxu1 %vm65_vm2, %v4581_v38 }
  0x2a   :  { %3886 = vmatprep.mubr.msk.bf16.mxu0 %vm65_vm2, %v4541_v19  ;;  %3898 = vmatprep.mubr.msk.bf16.mxu1 %vm65_vm2, %v4541_v19 }
  0x31   :  { %3887 = vmatmul.mubr.msk.bf16.vlgmr.msra.gmra.mxu0 %vm65_vm2, %v4554_v26  ;;  %3899 = vmatmul.mubr.msk.bf16.vlgmr.msra.gmra.mxu1 %vm65_vm2, %v4554_v26 }
  0x32   :  { %3907 = vmatpush3.bf16.msra.mxu0 %v772_v41  ;;  %3919 = vmatpush3.bf16.msra.mxu1 %v856_v42 }
  0x33   :  { %3890 = vmatprep.mubr.msk.bf16.mxu0 %vm65_vm2, %v4560_v30  ;;  %3902 = vmatprep.mubr.msk.bf16.mxu1 %vm65_vm2, %v4560_v30 }
  0x34   :  { %3908 = vmatprep.subr.bf16.mxu0 %v4269_v47  ;;  %3920 = vmatprep.subr.bf16.mxu1 %v4270_v48 }
  0x36   :  { %3909 = vmatpush3.bf16.msra.mxu0 %v4269_v47  ;;  %3921 = vmatpush3.bf16.msra.mxu1 %v4270_v48 }
  0x37   :  { %4240 = vmatprep.subr.msk.bf16.mxu0 %vm114_vm0, %v4271_v39  ;;  %4241 = vmatprep.subr.msk.bf16.mxu1 %vm114_vm0, %v4272_v40 }
  0x39   :  { %3891 = vmatmul.mubr.msk.bf16.gmra.mxu0 %vm65_vm2, %v4581_v38  ;;  %3903 = vmatmul.mubr.msk.bf16.gmra.mxu1 %vm65_vm2, %v4581_v38 }
  0x3a   :  { %3910 = vmatprep.mubr.msk.bf16.mxu0 %vm65_vm2, %v4541_v19  ;;  %3922 = vmatprep.mubr.msk.bf16.mxu1 %vm65_vm2, %v4541_v19 }
  0x41   :  { %3911 = vmatmul.mubr.msk.bf16.vlgmr.msra.gmra.mxu0 %vm65_vm2, %v4554_v26  ;;  %3923 = vmatmul.mubr.msk.bf16.vlgmr.msra.gmra.mxu1 %vm65_vm2, %v4554_v26 }
  0x42   :  { %3931 = vmatpush3.bf16.msra.mxu0 %v1017_v43  ;;  %3943 = vmatpush3.bf16.msra.mxu1 %v1101_v44 }
  0x43   :  { %3914 = vmatprep.mubr.msk.bf16.mxu0 %vm65_vm2, %v4560_v30  ;;  %3926 = vmatprep.mubr.msk.bf16.mxu1 %vm65_vm2, %v4560_v30 }
  0x44   :  { %3932 = vmatprep.subr.bf16.mxu0 %v4273_v49  ;;  %3944 = vmatprep.subr.bf16.mxu1 %v4274_v50 }
  0x46   :  { %3933 = vmatpush3.bf16.msra.mxu0 %v4273_v49  ;;  %3945 = vmatpush3.bf16.msra.mxu1 %v4274_v50 }
  0x49   :  { %3915 = vmatmul.mubr.msk.bf16.gmra.mxu0 %vm65_vm2, %v4581_v38  ;;  %3927 = vmatmul.mubr.msk.bf16.gmra.mxu1 %vm65_vm2, %v4581_v38 }
  0x4a   :  { %3934 = vmatprep.mubr.msk.bf16.mxu0 %vm65_vm2, %v4541_v19  ;;  %3946 = vmatprep.mubr.msk.bf16.mxu1 %vm65_vm2, %v4541_v19 }
  0x51   :  { %3935 = vmatmul.mubr.msk.bf16.vlgmr.msra.gmra.mxu0 %vm65_vm2, %v4554_v26  ;;  %3947 = vmatmul.mubr.msk.bf16.vlgmr.msra.gmra.mxu1 %vm65_vm2, %v4554_v26 }
  0x52   :  { %3938 = vmatprep.mubr.msk.bf16.mxu0 %vm65_vm2, %v4560_v30  ;;  %3950 = vmatprep.mubr.msk.bf16.mxu1 %vm65_vm2, %v4560_v30 }
  0x59   :  { %3939 = vmatmul.mubr.msk.bf16.gmra.mxu0 %vm65_vm2, %v4581_v38  ;;  %3951 = vmatmul.mubr.msk.bf16.gmra.mxu1 %vm65_vm2, %v4581_v38 }
  0x5a   :  { %20 = vsyncpa [#allocation7], 0  ;;  %v4275_v51 = vld [vmem:[%s5405_s4 + $0x28] ss:$0 sps:$4 sm:$0x33]   ;;  %vm1358_vm4 = vcmask 1041408  }
  0x5b   :  { %v4276_v52 = vld [vmem:[%s5406_s5 + $0x28] ss:$0 sps:$4 sm:$0x33]   ;;  %4242 = vmatprep.subr.msk.bf16.mxu0 %vm1358_vm4, %v4275_v51  ;;  %v1360_v53 = vsel %vm1358_vm4, %v4275_v51, 0  ;;  %v4277_v55 = vld [vmem:[%s5405_s4 + $0x20] sm:$0xff]   ;;  %v4279_v57 = vld [vmem:[%s5405_s4 + $0x18] sm:$0xff]  }
  0x5c   :  { %4243 = vmatprep.subr.msk.bf16.mxu1 %vm1358_vm4, %v4276_v52  ;;  %v1456_v54 = vsel %vm1358_vm4, %v4276_v52, 0  ;;  %3955 = vmatpush3.bf16.msra.mxu0 %v1360_v53  ;;  %v4278_v56 = vld [vmem:[%s5406_s5 + $0x20] sm:$0xff]   ;;  %v4280_v58 = vld [vmem:[%s5406_s5 + $0x18] sm:$0xff]   ;;  %v4281_v59 = vld [vmem:[%s5405_s4 + $0x10] sm:$0xff]   ;;  %vm442_vm5 = vcmask 1046528   ;;  %vm931_vm6 = vcmask 1044480  }
  0x5d   :  { %3971 = vmatpush3.bf16.msra.mxu1 %v1456_v54  ;;  %3956 = vmatprep.subr.bf16.mxu0 %v4277_v55  ;;  %v4282_v60 = vld [vmem:[%s5406_s5 + $0x10] sm:$0xff]   ;;  %v4283_v61 = vld [vmem:[%s5405_s4 + $0x8] sm:$0xff]   ;;  %v4285_v63 = vld [vmem:[%s5405_s4] sm:$0xff]   ;;  %vm1176_vm7 = vcmask 1043456   ;;  %vm1257_vm8 = vcmask 683008   ;;  %vm1253_vm9 = vcmask 687104  }
  0x5e   :  { %3972 = vmatprep.subr.bf16.mxu1 %v4278_v56  ;;  %v4284_v62 = vld [vmem:[%s5406_s5 + $0x8] sm:$0xff]   ;;  %v4286_v0 = vld [vmem:[%s5406_s5] sm:$0xff]   ;;  %v4728_v1 = vld [vmem:[%s5405_s4 + $0x54] ss:$0 sps:$4 sm:$0x33]   ;;  %vm1298_vm10 = vcmask 685056  }
  0x5f   :  { %v4733_v2 = vld [vmem:[%s5406_s5 + $0x54] ss:$0 sps:$4 sm:$0x33]   ;;  %vm4401_vm11 = vmmov 0   ;;  %vm2433_vm12 = vcmask 648192   ;;  %vm2431_vm13 = vcmask 654336  }
  0x60   :  { %3957 = vmatpush3.bf16.msra.mxu0 %v4277_v55  ;;  %vm2494_vm14 = vcmask 1041409   ;;  %vm3039_vm15 = vcmask 982016   ;;  %vm3270_vm1 = vcmask 74752  }
  0x61   :  { %3973 = vmatpush3.bf16.msra.mxu1 %v4278_v56  ;;  %3958 = vmatprep.subr.bf16.mxu0 %v4279_v57 }
  0x62   :  { %3974 = vmatprep.subr.bf16.mxu1 %v4280_v58 }
  0x64   :  { %3959 = vmatpush3.bf16.msra.mxu0 %v4279_v57 }
  0x65   :  { %3975 = vmatpush3.bf16.msra.mxu1 %v4280_v58  ;;  %3960 = vmatprep.subr.bf16.mxu0 %v4281_v59 }
  0x66   :  { %3976 = vmatprep.subr.bf16.mxu1 %v4282_v60 }
  0x68   :  { %3961 = vmatpush3.bf16.msra.mxu0 %v4281_v59 }
  0x69   :  { %3977 = vmatpush3.bf16.msra.mxu1 %v4282_v60  ;;  %3962 = vmatprep.subr.bf16.mxu0 %v4283_v61 }
  0x6a   :  { %3978 = vmatprep.subr.bf16.mxu1 %v4284_v62 }
  0x6c   :  { %3963 = vmatpush3.bf16.msra.mxu0 %v4283_v61 }
  0x6d   :  { %3979 = vmatpush3.bf16.msra.mxu1 %v4284_v62  ;;  %3964 = vmatprep.subr.bf16.mxu0 %v4285_v63 }
  0x6e   :  { %3980 = vmatprep.subr.bf16.mxu1 %v4286_v0 }
  0x70   :  { %3965 = vmatpush3.bf16.msra.mxu0 %v4285_v63 }
  0x71   :  { %3981 = vmatpush3.bf16.msra.mxu1 %v4286_v0  ;;  %4244 = vmatprep.subr.msk.bf16.mxu0 %vm1358_vm4, %v4728_v1 }
  0x72   :  { %4245 = vmatprep.subr.msk.bf16.mxu1 %vm1358_vm4, %v4733_v2 }
  0xd1   :  { %v3840_v3 = vpop.f32.mrf.mxu0  ;;  %v4739_v4 = vpop.f32.mrf.mxu1 }
  0xd3   :  { %v4741_v5 = vpop.f32.mrf.mxu0  ;;  %v4743_v6 = vpop.f32.mrf.mxu1 }
  0xd5   :  { %v3841_v7 = vpop.f32.mrf.mxu0  ;;  %v3853_v9 = vpop.f32.mrf.mxu1 }
  0xd7   :  { %v4745_v10 = vpop.f32.mrf.mxu0  ;;  %v4747_v11 = vpop.f32.mrf.mxu1 }
  0xd9   :  { %v4749_v12 = vpop.f32.mrf.mxu0  ;;  %v4751_v13 = vpop.f32.mrf.mxu1 }
  0xdb   :  { %v4753_v14 = vpop.f32.mrf.mxu0  ;;  %v4755_v15 = vpop.f32.mrf.mxu1 }
  0xdd   :  { %v4757_v16 = vpop.f32.mrf.mxu0  ;;  %v4759_v17 = vpop.f32.mrf.mxu1 }
  0xdf   :  { %v4761_v18 = vpop.f32.mrf.mxu0  ;;  %v4763_v19 = vpop.f32.mrf.mxu1 }
  0xe1   :  { %v3864_v20 = vpop.f32.mrf.mxu0  ;;  %v3876_v21 = vpop.f32.mrf.mxu1 }
  0xe2   :  { %v446_v45 = vrot.slane %v3864_v20, 1  ;;  %v484_v49 = vrot.slane %v3876_v21, 1 }
  0xe3   :  { %v319_v22 = vpop.f32.mrf.mxu0  ;;  %v403_v23 = vpop.f32.mrf.mxu1 }
  0xe4   :  { %v443_v50 = vrot.slane %v319_v22, 1  ;;  %v481_v51 = vrot.slane %v403_v23, 1 }
  0xe5   :  { %v3865_v24 = vpop.f32.mrf.mxu0  ;;  %v3877_v25 = vpop.f32.mrf.mxu1 }
  0xe6   :  { %v448_v40 = vrot.slane %v3865_v24, 1  ;;  %v486_v43 = vrot.slane %v3877_v25, 1 }
  0xe7   :  { %v322_v26 = vpop.f32.mrf.mxu0  ;;  %v406_v27 = vpop.f32.mrf.mxu1 }
  0xe8   :  { %v444_v44 = vrot.slane %v322_v26, 1  ;;  %v482_v46 = vrot.slane %v406_v27, 1  ;;  %v449_v52 = vsel %vm442_vm5, %v446_v45, %v448_v40  ;;  %v468_v55 = vadd.f32 %v3841_v7, %v448_v40 }
  0xe9   :  { %v3868_v28 = vpop.f32.mrf.mxu0  ;;  %v4765_v29 = vpop.f32.mrf.mxu1  ;;  %v487_v56 = vsel %vm442_vm5, %v484_v49, %v486_v43  ;;  %v4794_v59 = vadd.f32 %v3853_v9, %v486_v43  ;;  %v467_v20 = vadd.f32 %v3840_v3, %v449_v52 }
  0xea   :  { %v445_v57 = vsel %vm442_vm5, %v443_v50, %v444_v44  ;;  %v447_v60 = vsel %vm442_vm5, %v444_v44, %v446_v45  ;;  %v483_v61 = vsel %vm442_vm5, %v481_v51, %v482_v46  ;;  %v485_v21 = vsel %vm442_vm5, %v482_v46, %v484_v49 }
  0xeb   :  { %v335_v30 = vpop.f32.mrf.mxu0  ;;  %v4767_v31 = vpop.f32.mrf.mxu1  ;;  %v453_v7 = vrot.slane %v3868_v28, 1  ;;  %v505_v23 = vadd.f32 %v4739_v4, %v487_v56  ;;  %v465_v24 = vadd.f32 %v445_v57, %v4741_v5  ;;  %v491_v9 = vrot.slane %v4765_v29, 1 }
  0xec   :  { %v503_v3 = vadd.f32 %v483_v61, %v4743_v6  ;;  %v488_v4 = vrot.slane %v4767_v31, 1 }
  0xed   :  { %v3869_v32 = vpop.f32.mrf.mxu0  ;;  %v3881_v33 = vpop.f32.mrf.mxu1 }
  0xee   :  { %v455_v58 = vrot.slane %v3869_v32, 1  ;;  %v493_v62 = vrot.slane %v3881_v33, 1  ;;  %v466_v32 = vadd.f32 %v447_v60, %v4745_v10  ;;  %v450_v33 = vrot.slane %v335_v30, 1 }
  0xef   :  { %v338_v34 = vpop.f32.mrf.mxu0  ;;  %v4769_v35 = vpop.f32.mrf.mxu1 }
  0xf0   :  { %v451_v22 = vrot.slane %v338_v34, 1  ;;  %v489_v25 = vrot.slane %v4769_v35, 1  ;;  %v456_v28 = vsel %vm442_vm5, %v453_v7, %v455_v58  ;;  %v504_v34 = vadd.f32 %v485_v21, %v4747_v11 }
  0xf1   :  { %v4771_v36 = vpop.f32.mrf.mxu0  ;;  %v4773_v37 = vpop.f32.mrf.mxu1  ;;  %v472_v5 = vadd.f32 %v4757_v16, %v455_v58  ;;  %v494_v29 = vsel %vm442_vm5, %v491_v9, %v493_v62  ;;  %v471_v11 = vadd.f32 %v4749_v12, %v456_v28  ;;  %v510_v31 = vadd.f32 %v4759_v17, %v493_v62 }
  0xf2   :  { %v452_v43 = vsel %vm442_vm5, %v450_v33, %v451_v22  ;;  %v454_v10 = vsel %vm442_vm5, %v451_v22, %v453_v7  ;;  %v490_v16 = vsel %vm442_vm5, %v488_v4, %v489_v25  ;;  %v492_v49 = vsel %vm442_vm5, %v489_v25, %v491_v9 }
  0xf3   :  { %v4775_v38 = vpop.f32.mrf.mxu0  ;;  %v4777_v39 = vpop.f32.mrf.mxu1  ;;  %v690_v50 = vrot.slane %v4771_v36, 2  ;;  %v509_v12 = vadd.f32 %v4751_v13, %v494_v29  ;;  %v469_v17 = vadd.f32 %v452_v43, %v4753_v14  ;;  %v470_v51 = vadd.f32 %v454_v10, %v4761_v18 }
  0xf4   :  { %v507_v57 = vadd.f32 %v490_v16, %v4755_v15  ;;  %v725_v36 = vrot.slane %v4777_v39, 2  ;;  %v508_v13 = vadd.f32 %v492_v49, %v4763_v19 }
  0xf5   :  { %v4779_v41 = vpop.f32.mrf.mxu0  ;;  %v4781_v42 = vpop.f32.mrf.mxu1 }
  0xf6   :  { %v692_v6 = vrot.slane %v4779_v41, 2  ;;  %v730_v30 = vrot.slane %v4781_v42, 2  ;;  %v728_v41 = vrot.slane %v4773_v37, 2 }
  0xf7   :  { %v4783_v47 = vpop.f32.mrf.mxu0  ;;  %v4785_v48 = vpop.f32.mrf.mxu1 }
  0xf8   :  { %v688_v44 = vrot.slane %v4783_v47, 2  ;;  %v726_v42 = vrot.slane %v4785_v48, 2  ;;  %v687_v47 = vrot.slane %v4775_v38, 2  ;;  %v693_v37 = vsel %vm114_vm0, %v690_v50, %v692_v6 }
  0xf9   :  { %v4788_v53 = vpop.f32.mrf.mxu0  ;;  %v4790_v54 = vpop.f32.mrf.mxu1  ;;  %v731_v48 = vsel %vm114_vm0, %v728_v41, %v730_v30  ;;  %v712_v14 = vadd.f32 %v692_v6, %v468_v55  ;;  %v711_v21 = vadd.f32 %v693_v37, %v467_v20  ;;  %v750_v19 = vadd.f32 %v730_v30, %v4794_v59 }
  0xfa   :  { %v689_v18 = vsel %vm114_vm0, %v687_v47, %v688_v44  ;;  %v691_v38 = vsel %vm114_vm0, %v688_v44, %v690_v50  ;;  %v727_v61 = vsel %vm114_vm0, %v725_v36, %v726_v42  ;;  %v729_v15 = vsel %vm114_vm0, %v726_v42, %v728_v41 }
  0xfb   :  { %v4798_v63 = vpop.f32.mrf.mxu0  ;;  %v4800_v0 = vpop.f32.mrf.mxu1  ;;  %v749_v7 = vadd.f32 %v731_v48, %v505_v23  ;;  %v709_v25 = vadd.f32 %v689_v18, %v465_v24  ;;  %v697_v33 = vrot.slane %v4788_v53, 2  ;;  %v735_v28 = vrot.slane %v4790_v54, 2 }
  0xfc   :  { %v710_v29 = vadd.f32 %v691_v38, %v466_v32  ;;  %v747_v43 = vadd.f32 %v727_v61, %v503_v3  ;;  %v732_v59 = vrot.slane %v4800_v0, 2 }
  0xfd   :  { %v4807_v26 = vpop.f32.mrf.mxu0  ;;  %v4809_v27 = vpop.f32.mrf.mxu1 }
  0xfe   :  { %v699_v39 = vrot.slane %v4807_v26, 2  ;;  %v737_v62 = vrot.slane %v4809_v27, 2  ;;  %v748_v26 = vadd.f32 %v729_v15, %v504_v34  ;;  %v694_v27 = vrot.slane %v4798_v63, 2 }
  0xff   :  { %v4818_v35 = vpop.f32.mrf.mxu0  ;;  %v4820_v40 = vpop.f32.mrf.mxu1 }
 0x100   :  { %v695_v55 = vrot.slane %v4818_v35, 2  ;;  %v733_v4 = vrot.slane %v4820_v40, 2  ;;  %v700_v35 = vsel %vm114_vm0, %v697_v33, %v699_v39  ;;  %v716_v24 = vadd.f32 %v699_v39, %v472_v5 }
 0x101   :  { %v4830_v45 = vpop.f32.mrf.mxu0  ;;  %v4832_v46 = vpop.f32.mrf.mxu1  ;;  %v738_v53 = vsel %vm114_vm0, %v735_v28, %v737_v62  ;;  %v754_v10 = vadd.f32 %v737_v62, %v510_v31  ;;  %v715_v16 = vadd.f32 %v700_v35, %v471_v11 }
 0x102   :  { %v696_v54 = vsel %vm114_vm0, %v694_v27, %v695_v55  ;;  %v698_v34 = vsel %vm114_vm0, %v695_v55, %v697_v33  ;;  %v734_v6 = vsel %vm114_vm0, %v732_v59, %v733_v4  ;;  %v4880_v5 = vadd.f32 %v738_v53, %v509_v12 }
 0x103   :  { %v4842_v52 = vpop.f32.mrf.mxu0  ;;  %v4844_v56 = vpop.f32.mrf.mxu1  ;;  %v935_v31 = vrot.slane %v4830_v45, 3  ;;  %v973_v44 = vrot.slane %v4832_v46, 3  ;;  %v4884_v41 = vadd.f32 %v696_v54, %v469_v17  ;;  %v736_v42 = vsel %vm114_vm0, %v733_v4, %v735_v28 }
 0x104   :  { %v932_v47 = vrot.slane %v4842_v52, 3  ;;  %v970_v36 = vrot.slane %v4844_v56, 3  ;;  %v4889_v37 = vadd.f32 %v698_v34, %v470_v51  ;;  %v4891_v11 = vadd.f32 %v734_v6, %v507_v57 }
 0x105   :  { %v3913_v58 = vpop.f32.mrf.mxu0  ;;  %v4853_v60 = vpop.f32.mrf.mxu1 }
 0x106   :  { %v937_v40 = vrot.slane %v3913_v58, 3  ;;  %v975_v32 = vrot.slane %v4853_v60, 3  ;;  %v4900_v58 = vadd.f32 %v736_v42, %v508_v13 }
 0x107   :  { %v811_v22 = vpop.f32.mrf.mxu0  ;;  %v895_v9 = vpop.f32.mrf.mxu1 }
 0x108   :  { %v933_v0 = vrot.slane %v811_v22, 3  ;;  %v971_v30 = vrot.slane %v895_v9, 3  ;;  %v938_v12 = vsel %vm931_vm6, %v935_v31, %v937_v40  ;;  %v976_v45 = vsel %vm931_vm6, %v973_v44, %v975_v32 }
 0x109   :  { %v4865_v20 = vpop.f32.mrf.mxu0  ;;  %v4867_v23 = vpop.f32.mrf.mxu1  ;;  %v957_v51 = vadd.f32 %v937_v40, %v712_v14  ;;  %v956_v15 = vadd.f32 %v938_v12, %v711_v21  ;;  %v994_v39 = vadd.f32 %v976_v45, %v749_v7  ;;  %v995_v62 = vadd.f32 %v975_v32, %v750_v19 }
 0x10a   :  { %v934_v17 = vsel %vm931_vm6, %v932_v47, %v933_v0  ;;  %v936_v18 = vsel %vm931_vm6, %v933_v0, %v935_v31  ;;  %v972_v38 = vsel %vm931_vm6, %v970_v36, %v971_v30  ;;  %v974_v56 = vsel %vm931_vm6, %v971_v30, %v973_v44 }
 0x10b   :  { %v4874_v3 = vpop.f32.mrf.mxu0  ;;  %v4876_v63 = vpop.f32.mrf.mxu1  ;;  %v942_v55 = vrot.slane %v4865_v20, 3  ;;  %v954_v22 = vadd.f32 %v934_v17, %v709_v25  ;;  %v955_v9 = vadd.f32 %v936_v18, %v710_v29  ;;  %v992_v33 = vadd.f32 %v972_v38, %v747_v43 }
 0x10c   :  { %v980_v28 = vrot.slane %v4867_v23, 3  ;;  %v993_v14 = vadd.f32 %v974_v56, %v748_v26  ;;  %v939_v27 = vrot.slane %v4874_v3, 3  ;;  %v977_v59 = vrot.slane %v4876_v63, 3 }
 0x10d   :  { %v3917_v49 = vpop.f32.mrf.mxu0  ;;  %v3929_v50 = vpop.f32.mrf.mxu1 }
 0x10e   :  { %v944_v52 = vrot.slane %v3917_v49, 3  ;;  %v982_v57 = vrot.slane %v3929_v50, 3 }
 0x10f   :  { %v827_v46 = vpop.f32.mrf.mxu0  ;;  %v4895_v48 = vpop.f32.mrf.mxu1 }
 0x110   :  { %v945_v35 = vsel %vm931_vm6, %v942_v55, %v944_v52  ;;  %v961_v21 = vadd.f32 %v944_v52, %v716_v24  ;;  %v983_v7 = vsel %vm931_vm6, %v980_v28, %v982_v57  ;;  %v999_v19 = vadd.f32 %v982_v57, %v754_v10 }
 0x111   :  { %v3936_v60 = vpop.f32.mrf.mxu0  ;;  %v3948_v61 = vpop.f32.mrf.mxu1  ;;  %v940_v20 = vrot.slane %v827_v46, 3  ;;  %v960_v40 = vadd.f32 %v945_v35, %v715_v16  ;;  %v978_v26 = vrot.slane %v4895_v48, 3  ;;  %v998_v16 = vadd.f32 %v983_v7, %v4880_v5 }
 0x112   :  { %v1180_v29 = vrot.slane %v3936_v60, 4  ;;  %v1218_v43 = vrot.slane %v3948_v61, 4 }
 0x113   :  { %v1053_v13 = vpop.f32.mrf.mxu0  ;;  %v1137_v4 = vpop.f32.mrf.mxu1  ;;  %v941_v47 = vsel %vm931_vm6, %v939_v27, %v940_v20  ;;  %v943_v36 = vsel %vm931_vm6, %v940_v20, %v942_v55  ;;  %v979_v57 = vsel %vm931_vm6, %v977_v59, %v978_v26  ;;  %v981_v60 = vsel %vm931_vm6, %v978_v26, %v980_v28 }
 0x114   :  { %v1177_v32 = vrot.slane %v1053_v13, 4  ;;  %v1215_v3 = vrot.slane %v1137_v4, 4  ;;  %v997_v26 = vadd.f32 %v981_v60, %v4900_v58 }
 0x115   :  { %v3937_v53 = vpop.f32.mrf.mxu0  ;;  %v3949_v25 = vpop.f32.mrf.mxu1 }
 0x116   :  { %v1182_v54 = vrot.slane %v3937_v53, 4  ;;  %v1220_v23 = vrot.slane %v3949_v25, 4 }
 0x117   :  { %v1056_v34 = vpop.f32.mrf.mxu0  ;;  %v1140_v63 = vpop.f32.mrf.mxu1 }
 0x118   :  { %v1183_v6 = vsel %vm1176_vm7, %v1180_v29, %v1182_v54  ;;  %v1202_v24 = vadd.f32 %v1182_v54, %v957_v51  ;;  %v1221_v0 = vsel %vm1176_vm7, %v1218_v43, %v1220_v23  ;;  %v1240_v10 = vadd.f32 %v1220_v23, %v995_v62 }
 0x119   :  { %v1201_v30 = vadd.f32 %v1183_v6, %v956_v15  ;;  %v1239_v31 = vadd.f32 %v1221_v0, %v994_v39  ;;  %v1178_v44 = vrot.slane %v1056_v34, 4  ;;  %v1216_v49 = vrot.slane %v1140_v63, 4  ;;  %v3940_v50 = vpop.f32.mrf.mxu0  ;;  %v3952_v42 = vpop.f32.mrf.mxu1 }
 0x11a   :  { %v1248_v12 = vmax.f32 %v1202_v24, %v1240_v10  ;;  %v1187_v15 = vrot.slane %v3940_v50, 4  ;;  %v1225_v13 = vrot.slane %v3952_v42, 4  ;;  %v996_v23 = vadd.f32 %v979_v57, %v4891_v11 }
 0x11b   :  { %v1247_v45 = vmax.f32 %v1201_v30, %v1239_v31  ;;  %v1179_v46 = vsel %vm1176_vm7, %v1177_v32, %v1178_v44  ;;  %v1181_v48 = vsel %vm1176_vm7, %v1178_v44, %v1180_v29  ;;  %v1217_v17 = vsel %vm1176_vm7, %v1215_v3, %v1216_v49  ;;  %v1069_v18 = vpop.f32.mrf.mxu0  ;;  %v1153_v38 = vpop.f32.mrf.mxu1 }
 0x11c   :  { %1258 = vst.msk [vmem:[#allocation3 + $0x18] sm:$0xf] %vm1257_vm8, %v1248_v12  ;;  %v1199_v52 = vadd.f32 %v1179_v46, %v954_v22  ;;  %v1200_v51 = vadd.f32 %v1181_v48, %v955_v9  ;;  %v1219_v5 = vsel %vm1176_vm7, %v1216_v49, %v1218_v43  ;;  %v1237_v56 = vadd.f32 %v1217_v17, %v992_v33 }
 0x11d   :  { %1256 = vst.msk [vmem:[#allocation3 + $0x10] sm:$0xff] %vm1253_vm9, %v1247_v45  ;;  %v1238_v61 = vadd.f32 %v1219_v5, %v993_v14  ;;  %v3941_v39 = vpop.f32.mrf.mxu0  ;;  %v3953_v62 = vpop.f32.mrf.mxu1  ;;  %v958_v22 = vadd.f32 %v941_v47, %v4884_v41  ;;  %v1184_v35 = vrot.slane %v1069_v18, 4  ;;  %v1222_v7 = vrot.slane %v1153_v38, 4 }
 0x11e   :  { %v1245_v55 = vmax.f32 %v1199_v52, %v1237_v56  ;;  %v1189_v4 = vrot.slane %v3941_v39, 4  ;;  %v1227_v27 = vrot.slane %v3953_v62, 4  ;;  %v959_v41 = vadd.f32 %v943_v36, %v4889_v37 }
 0x11f   :  { %v1246_v9 = vmax.f32 %v1200_v51, %v1238_v61  ;;  %v1072_v33 = vpop.f32.mrf.mxu0  ;;  %v1156_v20 = vpop.f32.mrf.mxu1  ;;  %v1553_v62 = vsel %vm1358_vm4, %v4728_v1, 0  ;;  %v4291_v1 = vld [vmem:[%s5405_s4 + $0x44] sm:$0xff]  }
 0x120   :  { %1254 = vst.msk [vmem:[#allocation3] sm:$0xff] %vm1253_vm9, %v1245_v55  ;;  %v1190_v28 = vsel %vm1176_vm7, %v1187_v15, %v1189_v4  ;;  %v1206_v59 = vadd.f32 %v1189_v4, %v961_v21  ;;  %v1228_v14 = vsel %vm1176_vm7, %v1225_v13, %v1227_v27  ;;  %v1244_v53 = vadd.f32 %v1227_v27, %v999_v19  ;;  %v3378_v21 = vld [vmem:[%s5404_s3] ss:$0 sm:$0xff]  ;;  %v4290_v4 = vld [vmem:[%s5406_s5 + $0x4c] sm:$0xff]  }
 0x121   :  { %1255 = vst.msk [vmem:[#allocation3 + $0x8] sm:$0xff] %vm1253_vm9, %v1246_v9  ;;  %v1205_v25 = vadd.f32 %v1190_v28, %v960_v40  ;;  %v1243_v29 = vadd.f32 %v1228_v14, %v998_v16  ;;  %v1185_v43 = vrot.slane %v1072_v33, 4  ;;  %v1223_v54 = vrot.slane %v1156_v20, 4  ;;  %v4293_v27 = vld [vmem:[%s5405_s4 + $0x3c] sm:$0xff]   ;;  %v4295_v9 = vld [vmem:[%s5405_s4 + $0x34] sm:$0xff]   ;;  %v4298_v33 = vld [vmem:[%s5406_s5 + $0x2c] sm:$0xff]  }
 0x122   :  { %v1252_v32 = vmax.f32 %v1206_v59, %v1244_v53  ;;  %v1650_v55 = vsel %vm1358_vm4, %v4733_v2, 0  ;;  %v4292_v2 = vld [vmem:[%s5406_s5 + $0x44] sm:$0xff]   ;;  %v4299_v20 = vld [vmem:[%s5405_s4 + $0x80] ss:$0 sps:$4 sm:$0x33]   ;;  %v4301_v53 = vld [vmem:[%s5405_s4 + $0x78] sm:$0xff]  }
 0x123   :  { %v1251_v3 = vmax.f32 %v1205_v25, %v1243_v29  ;;  %v1186_v19 = vsel %vm1176_vm7, %v1184_v35, %v1185_v43  ;;  %v1188_v34 = vsel %vm1176_vm7, %v1185_v43, %v1187_v15  ;;  %v1224_v40 = vsel %vm1176_vm7, %v1222_v7, %v1223_v54  ;;  %v4296_v35 = vld [vmem:[%s5406_s5 + $0x34] sm:$0xff]   ;;  %v4297_v7 = vld [vmem:[%s5405_s4 + $0x2c] sm:$0xff]   ;;  %v4300_v28 = vld [vmem:[%s5406_s5 + $0x80] ss:$0 sps:$4 sm:$0x33]  }
 0x124   :  { %v1265_v63 = vld [vmem:[#allocation3 + $0x10] ss:$2 sm:$0x3f]  ;;  %v1273_v6 = vld [vmem:[#allocation3 + $0x11] ss:$2 sm:$0x3f]  ;;  %v1203_v37 = vadd.f32 %v1186_v19, %v958_v22  ;;  %v1204_v11 = vadd.f32 %v1188_v34, %v959_v41  ;;  %v1226_v58 = vsel %vm1176_vm7, %v1223_v54, %v1225_v13  ;;  %v1241_v24 = vadd.f32 %v1224_v40, %v996_v23 }
 0x125   :  { %1262 = vst.msk [vmem:[#allocation3 + $0x38] sm:$0xf] %vm1257_vm8, %v1252_v32  ;;  %v1279_v0 = vmax.f32 %v1265_v63, %v1273_v6  ;;  %v1242_v10 = vadd.f32 %v1226_v58, %v997_v26  ;;  %v4289_v13 = vld [vmem:[%s5405_s4 + $0x4c] sm:$0xff]   ;;  %v4294_v22 = vld [vmem:[%s5406_s5 + $0x3c] sm:$0xff]   ;;  %v1783_v59 = vsel %vm1358_vm4, %v4299_v20, 0  ;;  %v1880_v14 = vsel %vm1358_vm4, %v4300_v28, 0 }
 0x126   :  { %1261 = vst.msk [vmem:[#allocation3 + $0x30] sm:$0xff] %vm1253_vm9, %v1251_v3  ;;  %v1249_v30 = vmax.f32 %v1203_v37, %v1241_v24  ;;  %v4302_v25 = vld [vmem:[%s5406_s5 + $0x78] sm:$0xff]   ;;  %v4303_v29 = vld [vmem:[%s5405_s4 + $0x70] sm:$0xff]   ;;  %v4305_v54 = vld [vmem:[%s5405_s4 + $0x68] sm:$0xff]  }
 0x127   :  { %v1290_v31 = vadd.f32 %v3378_v21, %v1279_v0  ;;  %v1250_v44 = vmax.f32 %v1204_v11, %v1242_v10  ;;  %v4304_v43 = vld [vmem:[%s5406_s5 + $0x70] sm:$0xff]   ;;  %v4306_v41 = vld [vmem:[%s5406_s5 + $0x68] sm:$0xff]   ;;  %v4307_v23 = vld [vmem:[%s5405_s4 + $0x60] sm:$0xff]  }
 0x128   :  { %v1263_v49 = vld [vmem:[#allocation3] ss:$2 sm:$0xff]  ;;  %v1271_v50 = vld [vmem:[#allocation3 + $0x1] ss:$2 sm:$0xff]  ;;  %1259 = vst.msk [vmem:[#allocation3 + $0x20] sm:$0xff] %vm1253_vm9, %v1249_v30  ;;  %v4309_v32 = vld [vmem:[%s5405_s4 + $0x58] sm:$0xff]  }
 0x129   :  { %v1294_v42 = vmax.f32 %v1290_v31, 0.0  ;;  %v1278_v16 = vmax.f32 %v1263_v49, %v1271_v50  ;;  %1260 = vst.msk [vmem:[#allocation3 + $0x28] sm:$0xff] %vm1253_vm9, %v1250_v44  ;;  %v4308_v26 = vld [vmem:[%s5406_s5 + $0x60] sm:$0xff]   ;;  %v4311_v3 = vld [vmem:[%s5405_s4 + $0xac] ss:$0 sps:$4 sm:$0x33]  }
 0x12a   :  { %v4312_v19 = vld [vmem:[%s5406_s5 + $0xac] ss:$0 sps:$4 sm:$0x33]   ;;  %v2013_v34 = vsel %vm1358_vm4, %v4311_v3, 0  ;;  %v4313_v63 = vld [vmem:[%s5405_s4 + $0xa4] sm:$0xff]   ;;  %v4315_v37 = vld [vmem:[%s5405_s4 + $0x9c] sm:$0xff]  }
 0x12b   :  { %1299 = vst.msk [vmem:[#allocation4 + $0x8] sm:$0x3f] %vm1298_vm10, %v1294_v42  ;;  %v1289_v47 = vadd.f32 %v3378_v21, %v1278_v16  ;;  %v2110_v40 = vsel %vm1358_vm4, %v4312_v19, 0  ;;  %v4314_v6 = vld [vmem:[%s5406_s5 + $0xa4] sm:$0xff]   ;;  %v4316_v11 = vld [vmem:[%s5406_s5 + $0x9c] sm:$0xff]   ;;  %v4317_v58 = vld [vmem:[%s5405_s4 + $0x94] sm:$0xff]  }
 0x12c   :  { %v4318_v24 = vld [vmem:[%s5406_s5 + $0x94] sm:$0xff]   ;;  %v4319_v0 = vld [vmem:[%s5405_s4 + $0x8c] sm:$0xff]   ;;  %v4321_v30 = vld [vmem:[%s5405_s4 + $0x84] sm:$0xff]  }
 0x12d   :  { %v1269_v36 = vld [vmem:[#allocation3 + $0x30] ss:$2 sm:$0x3f]  ;;  %v1277_v12 = vld [vmem:[#allocation3 + $0x31] ss:$2 sm:$0x3f] }
 0x12e   :  { %v1293_v45 = vmax.f32 %v1289_v47, 0.0  ;;  %v1281_v46 = vmax.f32 %v1269_v36, %v1277_v12  ;;  %v4320_v10 = vld [vmem:[%s5406_s5 + $0x8c] sm:$0xff]   ;;  %v4322_v31 = vld [vmem:[%s5406_s5 + $0x84] sm:$0xff]   ;;  %v4323_v44 = vld [vmem:[%s5405_s4 + $0xd8] ss:$0 sps:$4 sm:$0x33]  }
 0x12f   :  { %v4324_v49 = vld [vmem:[%s5406_s5 + $0xd8] ss:$0 sps:$4 sm:$0x33]   ;;  %v2243_v50 = vsel %vm1358_vm4, %v4323_v44, 0  ;;  %v4325_v16 = vld [vmem:[%s5405_s4 + $0xd0] sm:$0xff]   ;;  %v4327_v36 = vld [vmem:[%s5405_s4 + $0xc8] sm:$0xff]  }
 0x130   :  { %1297 = vst.msk [vmem:[#allocation4] sm:$0xff] %vm1253_vm9, %v1293_v45  ;;  %v1292_v48 = vadd.f32 %v3378_v21, %v1281_v46  ;;  %v1267_v17 = vld [vmem:[#allocation3 + $0x20] ss:$2 sm:$0xff]  ;;  %v1275_v18 = vld [vmem:[#allocation3 + $0x21] ss:$2 sm:$0xff]  ;;  %v2340_v42 = vsel %vm1358_vm4, %v4324_v49, 0 }
 0x131   :  { %v1280_v52 = vmax.f32 %v1267_v17, %v1275_v18  ;;  %v4326_v47 = vld [vmem:[%s5406_s5 + $0xd0] sm:$0xff]   ;;  %v4328_v12 = vld [vmem:[%s5406_s5 + $0xc8] sm:$0xff]   ;;  %v4329_v45 = vld [vmem:[%s5405_s4 + $0xc0] sm:$0xff]  }
 0x132   :  { %v1296_v38 = vmax.f32 %v1292_v48, 0.0  ;;  %v1303_v57 = vld [vmem:[#allocation4 + $0x8] sm:$0xff]  ;;  %v4330_v46 = vld [vmem:[%s5406_s5 + $0xc0] sm:$0xff]   ;;  %v4331_v48 = vld [vmem:[%s5405_s4 + $0xb8] sm:$0xff]  }
 0x133   :  { %v1291_v51 = vadd.f32 %v3378_v21, %v1280_v52  ;;  %v4310_v21 = vld [vmem:[%s5406_s5 + $0x58] sm:$0xff]   ;;  %v4333_v18 = vld [vmem:[%s5405_s4 + $0xb0] sm:$0xff]   ;;  %v4335_v52 = vld [vmem:[%s5408_s7 + $0x48] sm:$0xff]  }
 0x134   :  { %1301 = vst.msk [vmem:[#allocation4 + $0x18] sm:$0x3f] %vm1298_vm10, %v1296_v38  ;;  %v4332_v17 = vld [vmem:[%s5406_s5 + $0xb8] sm:$0xff]   ;;  %v4334_v38 = vld [vmem:[%s5406_s5 + $0xb0] sm:$0xff]  }
 0x135   :  { %v1295_v5 = vmax.f32 %v1291_v51, 0.0  ;;  %v4336_v51 = vld [vmem:[%s5408_s7 + $0x20] sm:$0xff]  }
 0x137   :  { %v1302_v56 = vld [vmem:[#allocation4] sm:$0xff]  ;;  %1300 = vst.msk [vmem:[#allocation4 + $0x10] sm:$0xff] %vm1253_vm9, %v1295_v5 }
 0x138   :  { %v4946_v60 = vpack.c.bf16 %v1303_v57, %v1302_v56  ;;  %v4337_v5 = vld [vmem:[%s5408_s7 + $0x40] sm:$0xff]   ;;  %v4338_v56 = vld [vmem:[%s5408_s7 + $0x18] sm:$0xff]  }
 0x139   :  { %v4339_v57 = vld [vmem:[%s5408_s7 + $0x38] sm:$0xff]  }
 0x13a   :  { %3966 = vmatprep.mubr.msk.bf16.mxu0 %vm1253_vm9, %v4946_v60  ;;  %3982 = vmatprep.mubr.msk.bf16.mxu1 %vm1253_vm9, %v4946_v60 }
 0x13b   :  { %v1305_v15 = vld [vmem:[#allocation4 + $0x18] sm:$0xff] }
 0x13e   :  { %v1304_v61 = vld [vmem:[#allocation4 + $0x10] sm:$0xff] }
 0x13f   :  { %v4952_v39 = vpack.c.bf16 %v1305_v15, %v1304_v61  ;;  %v4341_v61 = vld [vmem:[%s5408_s7 + $0x30] sm:$0xff]   ;;  %v4342_v15 = vld [vmem:[%s5408_s7 + $0x8] sm:$0xff]  }
 0x141   :  { %3967 = vmatmul.mubr.msk.bf16.vlgmr.msra.gmra.mxu0 %vm1253_vm9, %v4952_v39  ;;  %3983 = vmatmul.mubr.msk.bf16.vlgmr.msra.gmra.mxu1 %vm1253_vm9, %v4952_v39 }
 0x142   :  { %3987 = vmatpush3.bf16.msra.mxu0 %v1553_v62  ;;  %4003 = vmatpush3.bf16.msra.mxu1 %v1650_v55  ;;  %v4344_v62 = vld [vmem:[%s5408_s7] sm:$0xff]  }
 0x143   :  { %3998 = vmatprep.mubr.msk.bf16.mxu0 %vm1253_vm9, %v4946_v60  ;;  %4014 = vmatprep.mubr.msk.bf16.mxu1 %vm1253_vm9, %v4946_v60 }
 0x144   :  { %3988 = vmatprep.subr.bf16.mxu0 %v4289_v13  ;;  %4004 = vmatprep.subr.bf16.mxu1 %v4290_v4 }
 0x146   :  { %3989 = vmatpush3.bf16.msra.mxu0 %v4289_v13  ;;  %4005 = vmatpush3.bf16.msra.mxu1 %v4290_v4 }
 0x147   :  { %3990 = vmatprep.subr.bf16.mxu0 %v4291_v1  ;;  %4006 = vmatprep.subr.bf16.mxu1 %v4292_v2 }
 0x14a   :  { %3991 = vmatpush3.bf16.msra.mxu0 %v4291_v1  ;;  %4007 = vmatpush3.bf16.msra.mxu1 %v4292_v2 }
 0x14b   :  { %3992 = vmatprep.subr.bf16.mxu0 %v4293_v27  ;;  %4008 = vmatprep.subr.bf16.mxu1 %v4294_v22 }
 0x14e   :  { %3993 = vmatpush3.bf16.msra.mxu0 %v4293_v27  ;;  %4009 = vmatpush3.bf16.msra.mxu1 %v4294_v22 }
 0x14f   :  { %3994 = vmatprep.subr.bf16.mxu0 %v4295_v9  ;;  %4010 = vmatprep.subr.bf16.mxu1 %v4296_v35 }
 0x152   :  { %3995 = vmatpush3.bf16.msra.mxu0 %v4295_v9  ;;  %4011 = vmatpush3.bf16.msra.mxu1 %v4296_v35 }
 0x153   :  { %3996 = vmatprep.subr.bf16.mxu0 %v4297_v7  ;;  %4012 = vmatprep.subr.bf16.mxu1 %v4298_v33 }
 0x156   :  { %3997 = vmatpush3.bf16.msra.mxu0 %v4297_v7  ;;  %4013 = vmatpush3.bf16.msra.mxu1 %v4298_v33 }
 0x157   :  { %4246 = vmatprep.subr.msk.bf16.mxu0 %vm1358_vm4, %v4299_v20  ;;  %4247 = vmatprep.subr.msk.bf16.mxu1 %vm1358_vm4, %v4300_v28 }
 0x159   :  { %3999 = vmatmul.mubr.msk.bf16.vlgmr.msra.gmra.mxu0 %vm1253_vm9, %v4952_v39  ;;  %4015 = vmatmul.mubr.msk.bf16.vlgmr.msra.gmra.mxu1 %vm1253_vm9, %v4952_v39 }
 0x15a   :  { %4019 = vmatpush3.bf16.msra.mxu0 %v1783_v59  ;;  %4030 = vmatprep.mubr.msk.bf16.mxu0 %vm1253_vm9, %v4946_v60 }
 0x15b   :  { %4035 = vmatpush3.bf16.msra.mxu1 %v1880_v14  ;;  %4046 = vmatprep.mubr.msk.bf16.mxu1 %vm1253_vm9, %v4946_v60 }
 0x15c   :  { %4020 = vmatprep.subr.bf16.mxu0 %v4301_v53  ;;  %4036 = vmatprep.subr.bf16.mxu1 %v4302_v25 }
 0x15e   :  { %4021 = vmatpush3.bf16.msra.mxu0 %v4301_v53 }
 0x15f   :  { %4037 = vmatpush3.bf16.msra.mxu1 %v4302_v25  ;;  %4022 = vmatprep.subr.bf16.mxu0 %v4303_v29 }
 0x160   :  { %4038 = vmatprep.subr.bf16.mxu1 %v4304_v43 }
 0x162   :  { %4023 = vmatpush3.bf16.msra.mxu0 %v4303_v29 }
 0x163   :  { %4039 = vmatpush3.bf16.msra.mxu1 %v4304_v43  ;;  %4024 = vmatprep.subr.bf16.mxu0 %v4305_v54 }
 0x164   :  { %4040 = vmatprep.subr.bf16.mxu1 %v4306_v41 }
 0x166   :  { %4025 = vmatpush3.bf16.msra.mxu0 %v4305_v54 }
 0x167   :  { %4041 = vmatpush3.bf16.msra.mxu1 %v4306_v41  ;;  %4026 = vmatprep.subr.bf16.mxu0 %v4307_v23 }
 0x168   :  { %4042 = vmatprep.subr.bf16.mxu1 %v4308_v26 }
 0x16a   :  { %4027 = vmatpush3.bf16.msra.mxu0 %v4307_v23 }
 0x16b   :  { %4043 = vmatpush3.bf16.msra.mxu1 %v4308_v26  ;;  %4028 = vmatprep.subr.bf16.mxu0 %v4309_v32 }
 0x16c   :  { %4044 = vmatprep.subr.bf16.mxu1 %v4310_v21 }
 0x16e   :  { %4029 = vmatpush3.bf16.msra.mxu0 %v4309_v32 }
 0x16f   :  { %4045 = vmatpush3.bf16.msra.mxu1 %v4310_v21  ;;  %4248 = vmatprep.subr.msk.bf16.mxu0 %vm1358_vm4, %v4311_v3 }
 0x170   :  { %4249 = vmatprep.subr.msk.bf16.mxu1 %vm1358_vm4, %v4312_v19 }
 0x171   :  { %4031 = vmatmul.mubr.msk.bf16.vlgmr.msra.gmra.mxu0 %vm1253_vm9, %v4952_v39 }
 0x172   :  { %4047 = vmatmul.mubr.msk.bf16.vlgmr.msra.gmra.mxu1 %vm1253_vm9, %v4952_v39  ;;  %4051 = vmatpush3.bf16.msra.mxu0 %v2013_v34 }
 0x173   :  { %4062 = vmatprep.mubr.msk.bf16.mxu0 %vm1253_vm9, %v4946_v60  ;;  %4067 = vmatpush3.bf16.msra.mxu1 %v2110_v40 }
 0x174   :  { %4078 = vmatprep.mubr.msk.bf16.mxu1 %vm1253_vm9, %v4946_v60  ;;  %4052 = vmatprep.subr.bf16.mxu0 %v4313_v63 }
 0x175   :  { %4068 = vmatprep.subr.bf16.mxu1 %v4314_v6 }
 0x176   :  { %4053 = vmatpush3.bf16.msra.mxu0 %v4313_v63 }
 0x177   :  { %4069 = vmatpush3.bf16.msra.mxu1 %v4314_v6  ;;  %4054 = vmatprep.subr.bf16.mxu0 %v4315_v37 }
 0x178   :  { %4070 = vmatprep.subr.bf16.mxu1 %v4316_v11 }
 0x17a   :  { %4055 = vmatpush3.bf16.msra.mxu0 %v4315_v37 }
 0x17b   :  { %4071 = vmatpush3.bf16.msra.mxu1 %v4316_v11  ;;  %4056 = vmatprep.subr.bf16.mxu0 %v4317_v58 }
 0x17c   :  { %4072 = vmatprep.subr.bf16.mxu1 %v4318_v24 }
 0x17e   :  { %4057 = vmatpush3.bf16.msra.mxu0 %v4317_v58 }
 0x17f   :  { %4073 = vmatpush3.bf16.msra.mxu1 %v4318_v24  ;;  %4058 = vmatprep.subr.bf16.mxu0 %v4319_v0 }
 0x180   :  { %4074 = vmatprep.subr.bf16.mxu1 %v4320_v10 }
 0x182   :  { %4059 = vmatpush3.bf16.msra.mxu0 %v4319_v0 }
 0x183   :  { %4075 = vmatpush3.bf16.msra.mxu1 %v4320_v10  ;;  %4060 = vmatprep.subr.bf16.mxu0 %v4321_v30 }
 0x184   :  { %4076 = vmatprep.subr.bf16.mxu1 %v4322_v31 }
 0x186   :  { %4061 = vmatpush3.bf16.msra.mxu0 %v4321_v30 }
 0x187   :  { %4077 = vmatpush3.bf16.msra.mxu1 %v4322_v31  ;;  %4250 = vmatprep.subr.msk.bf16.mxu0 %vm1358_vm4, %v4323_v44 }
 0x188   :  { %4251 = vmatprep.subr.msk.bf16.mxu1 %vm1358_vm4, %v4324_v49 }
 0x189   :  { %4063 = vmatmul.mubr.msk.bf16.vlgmr.msra.gmra.mxu0 %vm1253_vm9, %v4952_v39 }
 0x18a   :  { %4079 = vmatmul.mubr.msk.bf16.vlgmr.msra.gmra.mxu1 %vm1253_vm9, %v4952_v39  ;;  %4083 = vmatpush3.bf16.msra.mxu0 %v2243_v50 }
 0x18b   :  { %4094 = vmatprep.mubr.msk.bf16.mxu0 %vm1253_vm9, %v4946_v60  ;;  %4099 = vmatpush3.bf16.msra.mxu1 %v2340_v42 }
 0x18c   :  { %4110 = vmatprep.mubr.msk.bf16.mxu1 %vm1253_vm9, %v4946_v60  ;;  %4084 = vmatprep.subr.bf16.mxu0 %v4325_v16  ;;  %v4340_v60 = vld [vmem:[%s5408_s7 + $0x10] sm:$0xff]  }
 0x18d   :  { %4100 = vmatprep.subr.bf16.mxu1 %v4326_v47 }
 0x18e   :  { %4085 = vmatpush3.bf16.msra.mxu0 %v4325_v16 }
 0x18f   :  { %4101 = vmatpush3.bf16.msra.mxu1 %v4326_v47  ;;  %4086 = vmatprep.subr.bf16.mxu0 %v4327_v36 }
 0x190   :  { %4102 = vmatprep.subr.bf16.mxu1 %v4328_v12 }
 0x192   :  { %4087 = vmatpush3.bf16.msra.mxu0 %v4327_v36 }
 0x193   :  { %4103 = vmatpush3.bf16.msra.mxu1 %v4328_v12  ;;  %4088 = vmatprep.subr.bf16.mxu0 %v4329_v45 }
 0x194   :  { %4104 = vmatprep.subr.bf16.mxu1 %v4330_v46 }
 0x196   :  { %4089 = vmatpush3.bf16.msra.mxu0 %v4329_v45 }
 0x197   :  { %4105 = vmatpush3.bf16.msra.mxu1 %v4330_v46  ;;  %4090 = vmatprep.subr.bf16.mxu0 %v4331_v48 }
 0x198   :  { %4106 = vmatprep.subr.bf16.mxu1 %v4332_v17 }
 0x19a   :  { %4091 = vmatpush3.bf16.msra.mxu0 %v4331_v48 }
 0x19b   :  { %4107 = vmatpush3.bf16.msra.mxu1 %v4332_v17  ;;  %4092 = vmatprep.subr.bf16.mxu0 %v4333_v18 }
 0x19c   :  { %4108 = vmatprep.subr.bf16.mxu1 %v4334_v38 }
 0x19e   :  { %4093 = vmatpush3.bf16.msra.mxu0 %v4333_v18 }
 0x19f   :  { %4109 = vmatpush3.bf16.msra.mxu1 %v4334_v38  ;;  %4114 = vmatprep.subr.bf16.mxu0 %v4400_v8 }
 0x1a0   :  { %4128 = vmatprep.subr.bf16.mxu1 %v4400_v8 }
 0x1a1   :  { %4095 = vmatmul.mubr.msk.bf16.vlgmr.msra.gmra.mxu0 %vm1253_vm9, %v4952_v39 }
 0x1a2   :  { %4111 = vmatmul.mubr.msk.bf16.vlgmr.msra.gmra.mxu1 %vm1253_vm9, %v4952_v39  ;;  %4124 = vmatprep.mubr.msk.bf16.mxu0 %vm4401_vm11, %v4400_v8  ;;  %v4343_v39 = vld [vmem:[%s5408_s7 + $0x28] sm:$0xff]  }
 0x1a3   :  { %4138 = vmatprep.mubr.msk.bf16.mxu1 %vm4401_vm11, %v4400_v8  ;;  %4115 = vmatpush3.bf16.msra.mxu0 %v4335_v52 }
 0x1a4   :  { %4129 = vmatpush3.bf16.msra.mxu1 %v4336_v51  ;;  %4116 = vmatprep.subr.bf16.mxu0 %v4400_v8 }
 0x1a5   :  { %4130 = vmatprep.subr.bf16.mxu1 %v4400_v8 }
 0x1a7   :  { %4117 = vmatpush3.bf16.msra.mxu0 %v4337_v5 }
 0x1a8   :  { %4131 = vmatpush3.bf16.msra.mxu1 %v4338_v56  ;;  %4118 = vmatprep.subr.bf16.mxu0 %v4400_v8 }
 0x1a9   :  { %4132 = vmatprep.subr.bf16.mxu1 %v4400_v8 }
 0x1ab   :  { %4119 = vmatpush3.bf16.msra.mxu0 %v4339_v57 }
 0x1ac   :  { %4133 = vmatpush3.bf16.msra.mxu1 %v4340_v60  ;;  %4120 = vmatprep.subr.bf16.mxu0 %v4400_v8 }
 0x1ad   :  { %4134 = vmatprep.subr.bf16.mxu1 %v4400_v8 }
 0x1af   :  { %4121 = vmatpush3.bf16.msra.mxu0 %v4341_v61 }
 0x1b0   :  { %4135 = vmatpush3.bf16.msra.mxu1 %v4342_v15  ;;  %4122 = vmatprep.subr.bf16.mxu0 %v4400_v8 }
 0x1b1   :  { %4136 = vmatprep.subr.bf16.mxu1 %v4400_v8 }
 0x1b3   :  { %4123 = vmatpush3.bf16.msra.mxu0 %v4343_v39 }
 0x1b4   :  { %4137 = vmatpush3.bf16.msra.mxu1 %v4344_v62  ;;  %4142 = vmatprep.subr.bf16.mxu0 %v4400_v8 }
 0x1b5   :  { %4156 = vmatprep.subr.bf16.mxu1 %v4400_v8 }
 0x201   :  { %v3968_v55 = vpop.f32.mrf.mxu0  ;;  %v3984_v13 = vpop.f32.mrf.mxu1 }
 0x203   :  { %v1396_v4 = vpop.f32.mrf.mxu0  ;;  %v1492_v1 = vpop.f32.mrf.mxu1 }
 0x205   :  { %v3969_v2 = vpop.f32.mrf.mxu0  ;;  %v3985_v27 = vpop.f32.mrf.mxu1 }
 0x207   :  { %v1399_v22 = vpop.f32.mrf.mxu0  ;;  %v1495_v35 = vpop.f32.mrf.mxu1 }
 0x219   :  { %v4000_v9 = vpop.f32.mrf.mxu0  ;;  %v4016_v7 = vpop.f32.mrf.mxu1 }
 0x21a   :  { %v1708_v63 = vrot.slane %v4000_v9, 1  ;;  %v1726_v6 = vrot.slane %v4016_v7, 1 }
 0x21b   :  { %v1589_v33 = vpop.f32.mrf.mxu0  ;;  %v1686_v20 = vpop.f32.mrf.mxu1 }
 0x21c   :  { %v1705_v30 = vrot.slane %v1589_v33, 1  ;;  %v1723_v31 = vrot.slane %v1686_v20, 1 }
 0x21d   :  { %v4001_v28 = vpop.f32.mrf.mxu0  ;;  %v4017_v59 = vpop.f32.mrf.mxu1 }
 0x21e   :  { %v1709_v19 = vrot.slane %v4001_v28, 1  ;;  %v1727_v34 = vrot.slane %v4017_v59, 1 }
 0x21f   :  { %v1592_v14 = vpop.f32.mrf.mxu0  ;;  %v1689_v25 = vpop.f32.mrf.mxu1 }
 0x220   :  { %v1706_v37 = vrot.slane %v1592_v14, 1  ;;  %v1710_v58 = vsel %vm442_vm5, %v1708_v63, %v1709_v19  ;;  %v1728_v24 = vsel %vm442_vm5, %v1726_v6, %v1727_v34  ;;  %v1724_v0 = vrot.slane %v1689_v25, 1 }
 0x221   :  { %v1718_v44 = vadd.f32 %v3969_v2, %v1709_v19  ;;  %v1717_v50 = vadd.f32 %v3968_v55, %v1710_v58  ;;  %v1735_v42 = vadd.f32 %v3984_v13, %v1728_v24  ;;  %v1736_v16 = vadd.f32 %v3985_v27, %v1727_v34 }
 0x222   :  { %v1707_v47 = vsel %vm442_vm5, %v1705_v30, %v1706_v37  ;;  %v1725_v12 = vsel %vm442_vm5, %v1723_v31, %v1724_v0  ;;  %v1716_v18 = vadd.f32 %v1706_v37, %v1399_v22  ;;  %v1734_v38 = vadd.f32 %v1724_v0, %v1495_v35 }
 0x223   :  { %v1715_v61 = vadd.f32 %v1707_v47, %v1396_v4  ;;  %v1733_v15 = vadd.f32 %v1725_v12, %v1492_v1 }
 0x231   :  { %v4032_v53 = vpop.f32.mrf.mxu0 }
 0x232   :  { %v4048_v29 = vpop.f32.mrf.mxu1  ;;  %v1938_v45 = vrot.slane %v4032_v53, 2 }
 0x233   :  { %v1819_v43 = vpop.f32.mrf.mxu0  ;;  %v1956_v52 = vrot.slane %v4048_v29, 2 }
 0x234   :  { %v1916_v54 = vpop.f32.mrf.mxu1  ;;  %v1935_v5 = vrot.slane %v1819_v43, 2 }
 0x235   :  { %v4033_v41 = vpop.f32.mrf.mxu0  ;;  %v1953_v39 = vrot.slane %v1916_v54, 2 }
 0x236   :  { %v4049_v23 = vpop.f32.mrf.mxu1  ;;  %v1939_v49 = vrot.slane %v4033_v41, 2 }
 0x237   :  { %v1822_v26 = vpop.f32.mrf.mxu0  ;;  %v1957_v46 = vrot.slane %v4049_v23, 2 }
 0x238   :  { %v5190_v21 = vpop.f32.mrf.mxu1  ;;  %v1936_v48 = vrot.slane %v1822_v26, 2  ;;  %v1940_v56 = vsel %vm114_vm0, %v1938_v45, %v1939_v49  ;;  %v1948_v35 = vadd.f32 %v1939_v49, %v1718_v44 }
 0x239   :  { %v1954_v51 = vrot.slane %v5190_v21, 2  ;;  %v1958_v13 = vsel %vm114_vm0, %v1956_v52, %v1957_v46  ;;  %v1947_v9 = vadd.f32 %v1940_v56, %v1717_v50  ;;  %v1966_v28 = vadd.f32 %v1957_v46, %v1736_v16 }
 0x23a   :  { %v1937_v2 = vsel %vm114_vm0, %v1935_v5, %v1936_v48  ;;  %v1965_v53 = vadd.f32 %v1958_v13, %v1735_v42  ;;  %v1946_v29 = vadd.f32 %v1936_v48, %v1716_v18 }
 0x23b   :  { %v1955_v7 = vsel %vm114_vm0, %v1953_v39, %v1954_v51  ;;  %v1945_v25 = vadd.f32 %v1937_v2, %v1715_v61  ;;  %v1964_v23 = vadd.f32 %v1954_v51, %v1734_v38  ;;  %v5219_v39 = vld [vmem:[%s5407_s6] ss:$0 sm:$0xff]  ;;  %vm3226_vm0 = vcmask 523264  }
 0x23c   :  { %v1963_v41 = vadd.f32 %v1955_v7, %v1733_v15 }
 0x249   :  { %v4064_v32 = vpop.f32.mrf.mxu0 }
 0x24a   :  { %v4080_v3 = vpop.f32.mrf.mxu1  ;;  %v2168_v27 = vrot.slane %v4064_v32, 3 }
 0x24b   :  { %v2049_v40 = vpop.f32.mrf.mxu0  ;;  %v2186_v22 = vrot.slane %v4080_v3, 3 }
 0x24c   :  { %v5192_v11 = vpop.f32.mrf.mxu1  ;;  %v2165_v33 = vrot.slane %v2049_v40, 3 }
 0x24d   :  { %v4065_v10 = vpop.f32.mrf.mxu0  ;;  %v2183_v26 = vrot.slane %v5192_v11, 3 }
 0x24e   :  { %v4081_v36 = vpop.f32.mrf.mxu1  ;;  %v2169_v57 = vrot.slane %v4065_v10, 3 }
 0x24f   :  { %v2052_v17 = vpop.f32.mrf.mxu0  ;;  %v2187_v60 = vrot.slane %v4081_v36, 3 }
 0x250   :  { %v2166_v62 = vrot.slane %v2052_v17, 3  ;;  %v2149_v55 = vpop.f32.mrf.mxu1  ;;  %v2170_v59 = vsel %vm931_vm6, %v2168_v27, %v2169_v57  ;;  %v2178_v32 = vadd.f32 %v2169_v57, %v1948_v35 }
 0x251   :  { %v2188_v4 = vsel %vm931_vm6, %v2186_v22, %v2187_v60  ;;  %v2184_v1 = vrot.slane %v2149_v55, 3  ;;  %v2177_v3 = vadd.f32 %v2170_v59, %v1947_v9  ;;  %v2196_v34 = vadd.f32 %v2187_v60, %v1966_v28 }
 0x252   :  { %v2167_v43 = vsel %vm931_vm6, %v2165_v33, %v2166_v62  ;;  %v2195_v19 = vadd.f32 %v2188_v4, %v1965_v53  ;;  %v2176_v40 = vadd.f32 %v2166_v62, %v1946_v29 }
 0x253   :  { %v2175_v6 = vadd.f32 %v2167_v43, %v1945_v25  ;;  %v2185_v37 = vsel %vm931_vm6, %v2183_v26, %v2184_v1  ;;  %v2194_v10 = vadd.f32 %v2184_v1, %v1964_v23 }
 0x254   :  { %v2193_v48 = vadd.f32 %v2185_v37, %v1963_v41 }
 0x261   :  { %v4096_v20 = vpop.f32.mrf.mxu0 }
 0x262   :  { %v4112_v14 = vpop.f32.mrf.mxu1  ;;  %v2398_v58 = vrot.slane %v4096_v20, 4 }
 0x263   :  { %v2279_v54 = vpop.f32.mrf.mxu0  ;;  %v2416_v30 = vrot.slane %v4112_v14, 4 }
 0x264   :  { %v2376_v21 = vpop.f32.mrf.mxu1  ;;  %v2395_v31 = vrot.slane %v2279_v54, 4 }
 0x265   :  { %v4097_v63 = vpop.f32.mrf.mxu0  ;;  %v2413_v50 = vrot.slane %v2376_v21, 4 }
 0x266   :  { %v2399_v24 = vrot.slane %v4097_v63, 4  ;;  %v4113_v0 = vpop.f32.mrf.mxu1 }
 0x267   :  { %v2417_v44 = vrot.slane %v4113_v0, 4  ;;  %v2282_v49 = vpop.f32.mrf.mxu0 }
 0x268   :  { %v2400_v11 = vsel %vm1176_vm7, %v2398_v58, %v2399_v24  ;;  %v2408_v42 = vadd.f32 %v2399_v24, %v2178_v32  ;;  %v2396_v16 = vrot.slane %v2282_v49, 4  ;;  %v2379_v47 = vpop.f32.mrf.mxu1 }
 0x269   :  { %v2407_v36 = vadd.f32 %v2400_v11, %v2177_v3  ;;  %v2418_v12 = vsel %vm1176_vm7, %v2416_v30, %v2417_v44  ;;  %v2426_v45 = vadd.f32 %v2417_v44, %v2196_v34  ;;  %v2414_v46 = vrot.slane %v2379_v47, 4  ;;  %v4345_v47 = vld [vmem:[%s5408_s7 + $0x70] sm:$0xff]  }
 0x26a   :  { %v2425_v17 = vadd.f32 %v2418_v12, %v2195_v19  ;;  %v2397_v18 = vsel %vm1176_vm7, %v2395_v31, %v2396_v16  ;;  %v2406_v38 = vadd.f32 %v2396_v16, %v2176_v40 }
 0x26b   :  { %v2430_v52 = vmax.f32 %v2408_v42, %v2426_v45  ;;  %v2405_v51 = vadd.f32 %v2397_v18, %v2175_v6  ;;  %v2415_v5 = vsel %vm1176_vm7, %v2413_v50, %v2414_v46  ;;  %v2424_v56 = vadd.f32 %v2414_v46, %v2194_v10  ;;  %v4346_v45 = vld [vmem:[%s5408_s7 + $0x98] sm:$0xff]  }
 0x26c   :  { %v2429_v57 = vmax.f32 %v2407_v36, %v2425_v17  ;;  %v2423_v60 = vadd.f32 %v2415_v5, %v2193_v48 }
 0x26d   :  { %2436 = vst.msk [vmem:[#allocation5 + $0x18] sm:$0x3] %vm2433_vm12, %v2430_v52  ;;  %v2428_v61 = vmax.f32 %v2406_v38, %v2424_v56  ;;  %v4347_v52 = vld [vmem:[%s5408_s7 + $0x68] sm:$0xff]  }
 0x26e   :  { %2435 = vst.msk [vmem:[#allocation5 + $0x10] sm:$0xff] %vm2431_vm13, %v2429_v57  ;;  %v2427_v15 = vmax.f32 %v2405_v51, %v2423_v60  ;;  %v4348_v51 = vld [vmem:[%s5408_s7 + $0x90] sm:$0xff]  }
 0x26f   :  { %2434 = vst.msk [vmem:[#allocation5 + $0x8] sm:$0x3] %vm2433_vm12, %v2428_v61  ;;  %v4349_v61 = vld [vmem:[%s5408_s7 + $0x60] sm:$0xff]  }
 0x270   :  { %2432 = vst.msk [vmem:[#allocation5] sm:$0xff] %vm2431_vm13, %v2427_v15  ;;  %v4350_v15 = vld [vmem:[%s5408_s7 + $0x88] sm:$0xff]  }
 0x275   :  { %v2467_v62 = vld [vmem:[#allocation5 + $0x12] sm:$0x1]  ;;  %v2469_v55 = vld [vmem:[#allocation5 + $0x13] sm:$0x1]  ;;  %v2438_v13 = vld [vmem:[#allocation5 + $0x10] sm:$0x1] }
 0x276   :  { %v2471_v2 = vmax.f32 %v2467_v62, %v2469_v55  ;;  %v2440_v27 = vld [vmem:[#allocation5 + $0x11] sm:$0x1]  ;;  %v2651_v1 = vld [vmem:[#allocation5 + $0x14] sm:$0x1]  ;;  %v2653_v14 = vld [vmem:[#allocation5 + $0x15] sm:$0x1] }
 0x277   :  { %v2466_v22 = vld [vmem:[#allocation5 + $0x2] sm:$0x1]  ;;  %v2468_v9 = vld [vmem:[#allocation5 + $0x3] sm:$0x1]  ;;  %v2437_v35 = vld [vmem:[#allocation5] sm:$0x1]  ;;  %v2442_v7 = vmax.f32 %v2438_v13, %v2440_v27  ;;  %v2655_v32 = vmax.f32 %v2651_v1, %v2653_v14 }
 0x278   :  { %v2470_v33 = vmax.f32 %v2466_v22, %v2468_v9  ;;  %v2473_v20 = vadd.f32 %v5219_v39, %v2471_v2  ;;  %v2439_v28 = vld [vmem:[#allocation5 + $0x1] sm:$0x1]  ;;  %v2755_v29 = vld [vmem:[#allocation5 + $0x16] sm:$0x1]  ;;  %v2757_v43 = vld [vmem:[#allocation5 + $0x17] sm:$0x1] }
 0x279   :  { %v2441_v59 = vmax.f32 %v2437_v35, %v2439_v28  ;;  %v2451_v4 = vadd.f32 %v5219_v39, %v2442_v7  ;;  %v2650_v19 = vld [vmem:[#allocation5 + $0x4] sm:$0x1]  ;;  %v2652_v34 = vld [vmem:[#allocation5 + $0x5] sm:$0x1]  ;;  %v2759_v40 = vmax.f32 %v2755_v29, %v2757_v43  ;;  %v2754_v37 = vld [vmem:[#allocation5 + $0x6] sm:$0x1]  ;;  %v2657_v44 = vadd.f32 %v5219_v39, %v2655_v32 }
 0x27a   :  { %v2472_v53 = vadd.f32 %v5219_v39, %v2470_v33  ;;  %v2475_v25 = vmax.f32 %v2473_v20, 0.0  ;;  %v2756_v58 = vld [vmem:[#allocation5 + $0x7] sm:$0x1]  ;;  %v2654_v31 = vmax.f32 %v2650_v19, %v2652_v34  ;;  %v2859_v27 = vld [vmem:[#allocation5 + $0x18] sm:$0x1]  ;;  %v4353_v14 = vld [vmem:[%s5408_s7 + $0x50] sm:$0xff]  }
 0x27b   :  { %v2450_v54 = vadd.f32 %v5219_v39, %v2441_v59  ;;  %v2453_v41 = vmax.f32 %v2451_v4, 0.0  ;;  %v2758_v11 = vmax.f32 %v2754_v37, %v2756_v58  ;;  %v2761_v42 = vadd.f32 %v5219_v39, %v2759_v40  ;;  %v2861_v22 = vld [vmem:[#allocation5 + $0x19] sm:$0x1]  ;;  %v4352_v35 = vld [vmem:[%s5408_s7 + $0x80] sm:$0xff]   ;;  %v2858_v4 = vld [vmem:[#allocation5 + $0x8] sm:$0x1] }
 0x27c   :  { %v2474_v23 = vmax.f32 %v2472_v53, 0.0  ;;  %v2477_v26 = vpack.c.bf16 %v2475_v25, %v2475_v25  ;;  %v2656_v48 = vadd.f32 %v5219_v39, %v2654_v31  ;;  %v2659_v17 = vmax.f32 %v2657_v44, 0.0  ;;  %v4351_v9 = vld [vmem:[%s5408_s7 + $0x58] sm:$0xff]   ;;  %v2860_v1 = vld [vmem:[#allocation5 + $0x9] sm:$0x1]  ;;  %v4361_v44 = vld [vmem:[%s5410_s9 + $0x30] sm:$0xff]  }
 0x27d   :  { %v2452_v21 = vmax.f32 %v2450_v54, 0.0  ;;  %v2455_v3 = vpack.c.bf16 %v2453_v41, %v2453_v41  ;;  %v2760_v18 = vadd.f32 %v5219_v39, %v2758_v11  ;;  %v2763_v38 = vmax.f32 %v2761_v42, 0.0  ;;  %v4354_v53 = vld [vmem:[%s5408_s7 + $0x78] sm:$0xff]   ;;  %v4355_v41 = vld [vmem:[%s5408_s7 + $0xc0] sm:$0xff]   ;;  %v4365_v42 = vld [vmem:[%s5410_s9 + $0x10] sm:$0xff]  }
 0x27e   :  { %v2476_v63 = vpack.c.bf16 %v2474_v23, %v2474_v23  ;;  %v2492_v6 = vunpack.c.l.b16 %v2477_v26  ;;  %v2658_v5 = vmax.f32 %v2656_v48, 0.0  ;;  %v2661_v56 = vpack.c.bf16 %v2659_v17, %v2659_v17  ;;  %v4364_v11 = vld [vmem:[%s5410_s9 + $0x18] sm:$0xff]   ;;  %v4371_v48 = vld [vmem:[%s5412_s11 + $0x10] sm:$0xff]  }
 0x27f   :  { %v2454_v24 = vpack.c.bf16 %v2452_v21, %v2452_v21  ;;  %v2573_v0 = vunpack.c.l.b16 %v2455_v3  ;;  %v2762_v57 = vmax.f32 %v2760_v18, 0.0  ;;  %v2765_v60 = vpack.c.bf16 %v2763_v38, %v2763_v38  ;;  %v4356_v3 = vld [vmem:[%s5408_s7 + $0xb8] sm:$0xff]  }
 0x280   :  { %v2491_v10 = vunpack.c.l.b16 %v2476_v63  ;;  %v2493_v30 = vrot.slane %v2492_v6, 7  ;;  %v2660_v62 = vpack.c.bf16 %v2658_v5, %v2658_v5  ;;  %v2676_v55 = vunpack.c.l.b16 %v2661_v56  ;;  %v4358_v6 = vld [vmem:[%s5408_s7 + $0xa8] sm:$0xff]  }
 0x281   :  { %v2572_v49 = vunpack.c.l.b16 %v2454_v24  ;;  %v2574_v50 = vrot.slane %v2573_v0, 7  ;;  %v2764_v13 = vpack.c.bf16 %v2762_v57, %v2762_v57  ;;  %v2780_v2 = vunpack.c.l.b16 %v2765_v60  ;;  %v4359_v24 = vld [vmem:[%s5408_s7 + $0xa0] sm:$0xff]  }
 0x282   :  { %v2495_v16 = vsel %vm2494_vm14, %v2493_v30, %v2491_v10  ;;  %v2675_v7 = vunpack.c.l.b16 %v2660_v62  ;;  %v2677_v33 = vrot.slane %v2676_v55, 7  ;;  %v2863_v20 = vmax.f32 %v2859_v27, %v2861_v22  ;;  %v4360_v30 = vld [vmem:[%s5410_s9 + $0x38] ss:$0 sps:$4 sm:$0xff]  }
 0x283   :  { %v2496_v36 = vpack.c.b16 %v2495_v16, %v2495_v16  ;;  %v2575_v12 = vsel %vm2494_vm14, %v2574_v50, %v2572_v49  ;;  %v2779_v28 = vunpack.c.l.b16 %v2764_v13  ;;  %v2781_v59 = vrot.slane %v2780_v2, 7  ;;  %v4362_v49 = vld [vmem:[%s5410_s9 + $0x28] sm:$0xff]   ;;  %v4363_v50 = vld [vmem:[%s5410_s9 + $0x20] sm:$0xff]  }
 0x284   :  { %v2576_v46 = vpack.c.b16 %v2575_v12, %v2575_v12  ;;  %v2678_v25 = vsel %vm2494_vm14, %v2677_v33, %v2675_v7  ;;  %v2862_v29 = vmax.f32 %v2858_v4, %v2860_v1  ;;  %v2865_v43 = vadd.f32 %v5219_v39, %v2863_v20  ;;  %v4366_v16 = vld [vmem:[%s5410_s9 + $0x8] sm:$0xff]   ;;  %v3618_v33 = vld [vmem:[%s5409_s8] ss:$0 sm:$0xff] }
 0x285   :  { %4125 = vmatmul.mubr.msk.bf16.vlgmr.msra.gmra.mxu0 %vm2431_vm13, %v2496_v36  ;;  %v2782_v54 = vsel %vm2494_vm14, %v2781_v59, %v2779_v28  ;;  %v2679_v23 = vpack.c.b16 %v2678_v25, %v2678_v25  ;;  %v3044_v31 = vsel %vm1176_vm7, %v4360_v30, 0  ;;  %v4368_v36 = vld [vmem:[%s5412_s11 + $0x28] ss:$0 sps:$4 sm:$0x33]  }
 0x286   :  { %4139 = vmatmul.mubr.msk.bf16.vlgmr.msra.gmra.mxu1 %vm2431_vm13, %v2576_v46  ;;  %4143 = vmatpush3.bf16.msra.mxu0 %v4345_v47  ;;  %v2783_v26 = vpack.c.b16 %v2782_v54, %v2782_v54  ;;  %v2864_v32 = vadd.f32 %v5219_v39, %v2862_v29  ;;  %v2867_v21 = vmax.f32 %v2865_v43, 0.0  ;;  %v4357_v39 = vld [vmem:[%s5408_s7 + $0xb0] sm:$0xff]   ;;  %v4367_v47 = vld [vmem:[%s5410_s9] sm:$0xff]   ;;  %v3143_v12 = vsel %vm1358_vm4, %v4368_v36, 0  ;;  %v4370_v46 = vld [vmem:[%s5412_s11 + $0x18] sm:$0xff]  }
 0x287   :  { %4157 = vmatpush3.bf16.msra.mxu1 %v4346_v45  ;;  %4144 = vmatprep.subr.bf16.mxu0 %v4400_v8  ;;  %v4369_v45 = vld [vmem:[%s5412_s11 + $0x20] sm:$0xff]   ;;  %v4372_v25 = vld [vmem:[%s5412_s11 + $0x8] sm:$0xff]   ;;  %v4374_v43 = vld [vmem:[%s5414_s13 + $0x18] sm:$0xff]  }
 0x288   :  { %4158 = vmatprep.subr.bf16.mxu1 %v4400_v8  ;;  %4152 = vmatprep.mubr.msk.bf16.mxu0 %vm4401_vm11, %v4400_v8  ;;  %v2866_v19 = vmax.f32 %v2864_v32, 0.0  ;;  %v2869_v34 = vpack.c.bf16 %v2867_v21, %v2867_v21  ;;  %v4373_v29 = vld [vmem:[%s5412_s11] sm:$0xff]   ;;  %v4375_v54 = vld [vmem:[%s5414_s13 + $0x10] sm:$0xff]  }
 0x289   :  { %4166 = vmatprep.mubr.msk.bf16.mxu1 %vm4401_vm11, %v4400_v8 }
 0x28a   :  { %4145 = vmatpush3.bf16.msra.mxu0 %v4347_v52  ;;  %v2868_v40 = vpack.c.bf16 %v2866_v19, %v2866_v19  ;;  %v2884_v63 = vunpack.c.l.b16 %v2869_v34 }
 0x28b   :  { %4159 = vmatpush3.bf16.msra.mxu1 %v4348_v51  ;;  %4146 = vmatprep.subr.bf16.mxu0 %v4400_v8 }
 0x28c   :  { %4160 = vmatprep.subr.bf16.mxu1 %v4400_v8  ;;  %v2883_v37 = vunpack.c.l.b16 %v2868_v40  ;;  %v2885_v58 = vrot.slane %v2884_v63, 7  ;;  %v4377_v40 = vld [vmem:[%s5414_s13] sm:$0xff]  }
 0x28d   :  { %v3629_v63 = vld [vmem:[%s5413_s12] ss:$0 sm:$0xff] }
 0x28e   :  { %4147 = vmatpush3.bf16.msra.mxu0 %v4349_v61  ;;  %v2886_v0 = vsel %vm2494_vm14, %v2885_v58, %v2883_v37 }
 0x28f   :  { %4161 = vmatpush3.bf16.msra.mxu1 %v4350_v15  ;;  %4148 = vmatprep.subr.bf16.mxu0 %v4400_v8  ;;  %v2887_v10 = vpack.c.b16 %v2886_v0, %v2886_v0 }
 0x290   :  { %4162 = vmatprep.subr.bf16.mxu1 %v4400_v8 }
 0x292   :  { %4149 = vmatpush3.bf16.msra.mxu0 %v4351_v9 }
 0x293   :  { %4163 = vmatpush3.bf16.msra.mxu1 %v4352_v35  ;;  %4150 = vmatprep.subr.bf16.mxu0 %v4400_v8 }
 0x294   :  { %4164 = vmatprep.subr.bf16.mxu1 %v4400_v8 }
 0x296   :  { %4151 = vmatpush3.bf16.msra.mxu0 %v4353_v14 }
 0x297   :  { %4165 = vmatpush3.bf16.msra.mxu1 %v4354_v53  ;;  %4170 = vmatprep.subr.bf16.mxu0 %v4400_v8 }
 0x298   :  { %4184 = vmatprep.subr.bf16.mxu1 %v4400_v8 }
 0x299   :  { %4153 = vmatmul.mubr.msk.bf16.vlgmr.msra.gmra.mxu0 %vm2431_vm13, %v2679_v23 }
 0x29a   :  { %4167 = vmatmul.mubr.msk.bf16.vlgmr.msra.gmra.mxu1 %vm2431_vm13, %v2783_v26  ;;  %4171 = vmatpush3.bf16.msra.mxu0 %v4355_v41  ;;  %v3619_v41 = vld [vmem:[%s5411_s10] ss:$0 sm:$0xff] }
 0x29b   :  { %4172 = vmatprep.subr.bf16.mxu0 %v4400_v8  ;;  %4180 = vmatprep.mubr.msk.bf16.mxu0 %vm4401_vm11, %v4400_v8 }
 0x29c   :  { %4200 = vmatprep.mubr.msk.bf16.mxu1 %vm4401_vm11, %v4400_v8  ;;  %4185 = vmatpush3.bf16.msra.mxu1 %v3044_v31  ;;  %v3637_v31 = vld [vmem:[%s5415_s14] ss:$0 sm:$0xff] }
 0x29d   :  { %4186 = vmatprep.subr.bf16.mxu1 %v4400_v8 }
 0x29e   :  { %4173 = vmatpush3.bf16.msra.mxu0 %v4356_v3 }
 0x29f   :  { %4174 = vmatprep.subr.bf16.mxu0 %v4400_v8 }
 0x2a0   :  { %4187 = vmatpush3.bf16.msra.mxu1 %v4361_v44 }
 0x2a1   :  { %4188 = vmatprep.subr.bf16.mxu1 %v4400_v8 }
 0x2a2   :  { %4175 = vmatpush3.bf16.msra.mxu0 %v4357_v39  ;;  %v4376_v39 = vld [vmem:[%s5414_s13 + $0x8] sm:$0xff]   ;;  %s4402_s13 = smov [#allocation6]  }
 0x2a3   :  { %4176 = vmatprep.subr.bf16.mxu0 %v4400_v8  ;;  %s3278_s5 = sshll.u32 %s4402_s13, 4  ;;  %s3279_s5 = int_to_ptr.vmem [resolvable:$true] %s3278_s5 }
 0x2a4   :  { %4189 = vmatpush3.bf16.msra.mxu1 %v4362_v49  ;;  %s4378_s12 = scalar_lea.vmem %s3279_s5, 32  ;;  %p4383_p1 = scmp.lt.s32.totalorder %s3279_s5, %s3279_s5 }
 0x2a5   :  { %4190 = vmatprep.subr.bf16.mxu1 %v4400_v8  ;;  %p4379_p0 = scmp.ne.s32.totalorder %s3279_s5, %s4378_s12  ;;  %p4384_p2 = scmp.lt.s32.totalorder %s4378_s12, %s4378_s12 }
 0x2a6   :  { %4177 = vmatpush3.bf16.msra.mxu0 %v4358_v6 }
 0x2a7   :  { %4178 = vmatprep.subr.bf16.mxu0 %v4400_v8  ;;  %p4385_p3 = por %p4384_p2, %p4383_p1 }
 0x2a8   :  { %4191 = vmatpush3.bf16.msra.mxu1 %v4363_v50 }
 0x2a9   :  { %4192 = vmatprep.subr.bf16.mxu1 %v4400_v8  ;;  %p4386_p4 = pnand %p4385_p3, %p4379_p0 }
 0x2aa   :  { %4179 = vmatpush3.bf16.msra.mxu0 %v4359_v24 }
 0x2ab   :  { %4204 = vmatprep.subr.bf16.mxu0 %v4400_v8 }
 0x2ac   :  { %4193 = vmatpush3.bf16.msra.mxu1 %v4364_v11 }
 0x2ad   :  { %4181 = vmatmul.mubr.msk.bf16.vlgmr.msra.gmra.mxu0 %vm2431_vm13, %v2887_v10  ;;  %4194 = vmatprep.subr.bf16.mxu1 %v4400_v8 }
 0x2ae   :  { %4216 = vmatprep.mubr.msk.bf16.mxu0 %vm4401_vm11, %v4400_v8  ;;  %4205 = vmatpush3.bf16.msra.mxu0 %v3143_v12 }
 0x2af   :  { %4206 = vmatprep.subr.bf16.mxu0 %v4400_v8 }
 0x2b0   :  { %4195 = vmatpush3.bf16.msra.mxu1 %v4365_v42 }
 0x2b1   :  { %4196 = vmatprep.subr.bf16.mxu1 %v4400_v8 }
 0x2b2   :  { %4207 = vmatpush3.bf16.msra.mxu0 %v4369_v45 }
 0x2b3   :  { %4208 = vmatprep.subr.bf16.mxu0 %v4400_v8 }
 0x2b4   :  { %4197 = vmatpush3.bf16.msra.mxu1 %v4366_v16 }
 0x2b5   :  { %4198 = vmatprep.subr.bf16.mxu1 %v4400_v8 }
 0x2b6   :  { %4209 = vmatpush3.bf16.msra.mxu0 %v4370_v46 }
 0x2b7   :  { %4210 = vmatprep.subr.bf16.mxu0 %v4400_v8 }
 0x2b8   :  { %4199 = vmatpush3.bf16.msra.mxu1 %v4367_v47 }
 0x2b9   :  { %4220 = vmatprep.subr.bf16.mxu1 %v4400_v8 }
 0x2ba   :  { %4211 = vmatpush3.bf16.msra.mxu0 %v4371_v48 }
 0x2bb   :  { %4212 = vmatprep.subr.bf16.mxu0 %v4400_v8 }
 0x2be   :  { %4213 = vmatpush3.bf16.msra.mxu0 %v4372_v25 }
 0x2bf   :  { %4214 = vmatprep.subr.bf16.mxu0 %v4400_v8 }
 0x2c2   :  { %4215 = vmatpush3.bf16.msra.mxu0 %v4373_v29 }
 0x345   :  { %v2564_v17 = vpop.f32.mrf.mxu0 }
 0x346   :  { %v2644_v18 = vpop.f32.mrf.mxu1 }
 0x347   :  { %v4126_v38 = vpop.f32.mrf.mxu0  ;;  %v2645_v22 = vadd.f32 %v2644_v18, %v2564_v17 }
 0x348   :  { %v4140_v52 = vpop.f32.mrf.mxu1 }
 0x349   :  { %v2567_v51 = vpop.f32.mrf.mxu0 }
 0x34a   :  { %v2647_v5 = vpop.f32.mrf.mxu1 }
 0x34b   :  { %v4127_v56 = vpop.f32.mrf.mxu0 }
 0x34c   :  { %v4141_v57 = vpop.f32.mrf.mxu1 }
 0x359   :  { %v2747_v60 = vpop.f32.mrf.mxu0 }
 0x35a   :  { %v2851_v61 = vpop.f32.mrf.mxu1  ;;  %v2753_v9 = vadd.f32 %v2747_v60, %v2645_v22 }
 0x35b   :  { %v4154_v15 = vpop.f32.mrf.mxu0 }
 0x35c   :  { %v4168_v62 = vpop.f32.mrf.mxu1  ;;  %v2857_v35 = vadd.f32 %v2851_v61, %v2753_v9 }
 0x35d   :  { %v2750_v55 = vpop.f32.mrf.mxu0 }
 0x35e   :  { %v2854_v13 = vpop.f32.mrf.mxu1 }
 0x35f   :  { %v4155_v2 = vpop.f32.mrf.mxu0 }
 0x360   :  { %v4169_v27 = vpop.f32.mrf.mxu1 }
 0x36d   :  { %v2955_v7 = vpop.f32.mrf.mxu0 }
 0x36e   :  { %v2961_v20 = vadd.f32 %v2955_v7, %v2857_v35 }
 0x36f   :  { %v4182_v28 = vpop.f32.mrf.mxu0 }
 0x370   :  { %v2969_v59 = vadd.f32 %v3618_v33, %v2961_v20 }
 0x371   :  { %v2958_v4 = vpop.f32.mrf.mxu0 }
 0x372   :  { %v2970_v1 = vmax.f32 %v2969_v59, 0.0 }
 0x373   :  { %v4183_v14 = vpop.f32.mrf.mxu0 }
 0x374   :  { %v2971_v53 = vpack.c.bf16 %v2970_v1, %v2970_v1 }
 0x376   :  { %4201 = vmatmul.mubr.msk.bf16.vlgmr.msra.gmra.mxu1 %vm3039_vm15, %v2971_v53 }
 0x377   :  { %4228 = vmatprep.mubr.msk.bf16.mxu1 %vm4401_vm11, %v4400_v8  ;;  %4221 = vmatpush3.bf16.msra.mxu1 %v4374_v43 }
 0x378   :  { %4222 = vmatprep.subr.bf16.mxu1 %v4400_v8 }
 0x37b   :  { %4223 = vmatpush3.bf16.msra.mxu1 %v4375_v54 }
 0x37c   :  { %4224 = vmatprep.subr.bf16.mxu1 %v4400_v8 }
 0x37f   :  { %4225 = vmatpush3.bf16.msra.mxu1 %v4376_v39 }
 0x380   :  { %4226 = vmatprep.subr.bf16.mxu1 %v4400_v8 }
 0x383   :  { %4227 = vmatpush3.bf16.msra.mxu1 %v4377_v40 }
 0x436   :  { %v3080_v23 = vpop.f32.mrf.mxu1 }
 0x437   :  { %v3081_v26 = vadd.f32 %v3619_v41, %v3080_v23 }
 0x438   :  { %v4202_v32 = vpop.f32.mrf.mxu1 }
 0x439   :  { %v3086_v21 = vmax.f32 %v3081_v26, 0.0 }
 0x43a   :  { %v3083_v3 = vpop.f32.mrf.mxu1 }
 0x43b   :  { %v3087_v19 = vpack.c.bf16 %v3086_v21, %v3086_v21 }
 0x43c   :  { %v4203_v34 = vpop.f32.mrf.mxu1 }
 0x43d   :  { %4217 = vmatmul.mubr.msk.bf16.vlgmr.msra.gmra.mxu0 %vm1253_vm9, %v3087_v19 }
 0x4fd   :  { %v3179_v6 = vpop.f32.mrf.mxu0 }
 0x4fe   :  { %v3180_v37 = vadd.f32 %v3629_v63, %v3179_v6 }
 0x4ff   :  { %v4218_v58 = vpop.f32.mrf.mxu0 }
 0x500   :  { %v3185_v24 = vmax.f32 %v3180_v37, 0.0 }
 0x501   :  { %v3182_v0 = vpop.f32.mrf.mxu0 }
 0x502   :  { %v3186_v10 = vpack.c.bf16 %v3185_v24, %v3185_v24 }
 0x503   :  { %v4219_v30 = vpop.f32.mrf.mxu0 }
 0x504   :  { %4229 = vmatmul.mubr.msk.bf16.vlgmr.msra.gmra.mxu1 %vm3226_vm0, %v3186_v10 }
 0x5c4   :  { %v3264_v8 = vpop.f32.mrf.mxu1 }
 0x5c5   :  { %v3265_v44 = vadd.f32 %v3637_v31, %v3264_v8 }
 0x5c6   :  { %v4230_v49 = vpop.f32.mrf.mxu1 }
 0x5c7   :  { %3271 = vst.msk [vmem:[#allocation6] sm:$0x3] %vm3270_vm1, %v3265_v44 }
 0x5c8   :  { %v3267_v50 = vpop.f32.mrf.mxu1 }
 0x5c9   :  { %4389 = shalt.err (!%p4386_p4)
}
 0x5ca   :  { %3281 = dma.vmem_to_hbm [thread:$0]  %s3279_s5, 32, %s5416_s15, [#allocation7]   ;;  %v4231_v11 = vpop.f32.mrf.mxu1 }
 0x5cb   :  { %4398 = dma.done.wait [#allocation7], 32  }
 0x5cc   :  { %4399 = vsyncadd [#allocation7], 4294967264 }
 0x5cd   :  { %3285 = vsyncpa [#allocation7], 1 }

</bundles_post_ra>
